<compile_context>
chip_gen: v6e
topology: v6e:2x2x1
jax: 0.10.0
libtpu: 0.0.40
codegen_flags: <defaults>
</compile_context>

<pallas_src>
import functools

import jax
import jax.numpy as jnp
from jax.experimental import pallas as pl
from jax.experimental.pallas import tpu as pltpu


def _round_up(v, m):
    return (v + m - 1) // m * m


def _fused_supermask_kernel(x_ref, *rest):
    """rest = (w1, m1, w2, m2, ..., wL, mL, o_ref): whole MLP for one batch tile.

    w_l: (Np_l, Kp_l) bf16 fixed weights (zero-padded), resident in VMEM.
    m_l: (Np_l, Kp_l) int8 {0,1} Bernoulli mask.
    """
    o_ref = rest[-1]
    wm_refs = rest[:-1]
    n_layers = len(wm_refs) // 2

    h = x_ref[...].astype(jnp.bfloat16)
    out = None
    for l in range(n_layers):
        w_ref = wm_refs[2 * l]
        m_ref = wm_refs[2 * l + 1]
        # Binary Bernoulli mask as int8; select (no cast+mul) keeps VALU light.
        w_eff = jnp.where(m_ref[...] != 0, w_ref[...], jnp.zeros_like(w_ref[...]))
        # F.linear: y = h @ w_eff.T expressed directly in "NT" form so the masked
        # (out, in) weight tile is never transposed (no XLU pass, no VMEM copy).
        acc = jax.lax.dot_general(
            h, w_eff,
            dimension_numbers=(((1,), (1,)), ((), ())),
            preferred_element_type=jnp.float32,
        )
        if l < n_layers - 1:
            h = jnp.maximum(acc, 0.0).astype(jnp.bfloat16)   # fused ReLU
        else:
            out = acc                                        # last layer: no ReLU
    o_ref[...] = out.astype(o_ref.dtype)


def fused_supermask_mlp(x, weights_p, masks_p, out_features):
    """Fused masked-MLP forward: relu(relu(relu(x W1')W2')W3')W4'.

    x:         (B, K) float32
    weights_p: list of padded bf16 (Np_l, Kp_l) fixed weights (nn.Linear layout)
    masks_p:   list of padded int8 {0,1} Bernoulli masks, same shapes
    """
    B, K = x.shape
    Kp0 = weights_p[0].shape[1]
    Np_last = weights_p[-1].shape[0]
    assert K <= Kp0

    # Batch tile: multiple of 8 sublanes, capped at 128. With >=2 batch tiles the
    # "parallel" grid axis lets v7x shard them across its two TensorCores; the
    # resident weights are still only DMA'd from HBM once (constant index_map).
    tb = min(128, _round_up(B, 8))
    Bp = _round_up(B, tb)

    xp = x if (B == Bp and K == Kp0) else jnp.pad(x, ((0, Bp - B), (0, Kp0 - K)))

    grid = (Bp // tb,)
    in_specs = [pl.BlockSpec((tb, Kp0), lambda i: (i, 0))]       # x: per batch tile
    flat_args = [xp]
    for w, m in zip(weights_p, masks_p):
        n_l, k_l = w.shape
        # Full-extent blocks with a constant block index: each weight/mask pair is
        # fetched into VMEM once and stays resident for all grid steps.
        in_specs.append(pl.BlockSpec((n_l, k_l), lambda i: (0, 0)))   # w_l (bf16)
        in_specs.append(pl.BlockSpec((n_l, k_l), lambda i: (0, 0)))   # m_l (int8)
        flat_args += [w, m]

    cost = pl.CostEstimate(
        flops=2 * Bp * sum(int(w.shape[0]) * int(w.shape[1]) for w in weights_p),
        transcendentals=0,
        bytes_accessed=int(
            xp.size * 4
            + sum(int(w.size) * 2 for w in weights_p)    # bf16 weights, read once
            + sum(int(m.size) * 1 for m in masks_p)      # int8 masks, read once
            + Bp * Np_last * 4                           # output
        ),
    )

    out_p = pl.pallas_call(
        _fused_supermask_kernel,
        out_shape=jax.ShapeDtypeStruct((Bp, Np_last), jnp.float32),
        grid_spec=pltpu.PrefetchScalarGridSpec(
            num_scalar_prefetch=0,
            grid=grid,
            in_specs=in_specs,
            out_specs=pl.BlockSpec((tb, Np_last), lambda i: (i, 0)),
        ),
        compiler_params=pltpu.CompilerParams(
            dimension_semantics=("parallel",),
            # Resident weights + double-buffered x/out tiles stay well under this;
            # <= 48 MiB leaves headroom on v7x's 64 MiB physical VMEM.
            vmem_limit_bytes=48 * 1024 * 1024,
        ),
        cost_estimate=cost,
    )(*flat_args)

    return out_p[:B, :out_features]


def prepare_params(params):
    """One-time parameter prep (fcw never changes): pad every layer's dims up to
    multiples of 128 and cast the fixed weights to bf16. Returns
    (weights_padded_bf16, mask_logits_padded_f32)."""
    weights_p, logits_p = [], []
    for fcw, mask_logits in params:
        n, k = fcw.shape
        n_p, k_p = _round_up(n, 128), _round_up(k, 128)
        w_p = jnp.pad(fcw, ((0, n_p - n), (0, k_p - k))).astype(jnp.bfloat16)
        # Padded logits get a large negative value -> padded mask is ~always 0.
        # (Harmless either way: the padded weight entries are exactly zero.)
        l_p = jnp.pad(mask_logits, ((0, n_p - n), (0, k_p - k)),
                      constant_values=-30.0)
        weights_p.append(w_p)
        logits_p.append(l_p)
    return weights_p, logits_p


def fc_supermask_encode_forward(x, weights_p, logits_p, key, out_features):
    """Returns (output, per-layer padded int8 Bernoulli masks)."""
    keys = jax.random.split(key, len(weights_p))
    masks_p = []
    for logits, k in zip(logits_p, keys):
        # MaskedLinear: s_m = sigmoid(mask); g_m = Bern(s_m).
        # TODO(synk): the Bernoulli draw uses jax.random in the wrapper (instead of
        # an in-kernel pltpu PRNG draw) so the pure-JAX reference can reproduce the
        # identical stochastic mask for the correctness check.
        p = jax.nn.sigmoid(logits)
        masks_p.append(jax.random.bernoulli(k, p).astype(jnp.int8))
    y = fused_supermask_mlp(x, weights_p, masks_p, out_features)
    return y, masks_p


if __name__ == "__main__":
    root = jax.random.PRNGKey(0)
    k_x, k_params, k_bern = jax.random.split(root, 3)

    # Small shapes consistent with the module's 784->512->256->128->64 pattern
    # (scaled down; several dims exercise the non-multiple-of-128 padding path).
    batch = 4
    dims = [200, 160, 128, 96, 64]   # x_dim, h_dim1, h_dim2, h_dim3, h_dim4

    # Parameter init matching MaskedLinear.__init__:
    #   fcw  = torch.randn((out, in))   (fixed, never trained)
    #   mask = torch.randn_like(fcw)    (trainable logits)
    params = []
    pkeys = jax.random.split(k_params, 2 * (len(dims) - 1))
    for li in range(len(dims) - 1):
        in_f, out_f = dims[li], dims[li + 1]
        fcw = jax.random.normal(pkeys[2 * li], (out_f, in_f), jnp.float32)
        mask_logits = jax.random.normal(pkeys[2 * li + 1], (out_f, in_f), jnp.float32)
        params.append((fcw, mask_logits))

    weights_p, logits_p = prepare_params(params)   # one-time pad + bf16 cast
    x = jax.random.normal(k_x, (batch, dims[0]), jnp.float32)

    fwd = jax.jit(fc_supermask_encode_forward, static_argnames=("out_features",))
    y, masks_p = fwd(x, weights_p, logits_p, k_bern, out_features=dims[-1])
    y = jax.block_until_ready(y)

    # Pure-JAX reference using the *same* Bernoulli masks and the same
    # bf16 x bf16 -> f32 matmul precision as the kernel.
    n_layers = len(params)
    h_ref = x
    for idx, ((fcw, _), g_pad) in enumerate(zip(params, masks_p)):
        n, k = fcw.shape
        g = g_pad[:n, :k]
        w_eff = jnp.where(g != 0, fcw, 0.0).astype(jnp.bfloat16)
        h_ref = jax.lax.dot_general(
            h_ref.astype(jnp.bfloat16), w_eff,
            dimension_numbers=(((1,), (1,)), ((), ())),
            preferred_element_type=jnp.float32,
        )
        if idx < n_layers - 1:
            h_ref = jnp.maximum(h_ref, 0.0)

    assert y.shape == (batch, dims[-1])
    assert jnp.allclose(y, h_ref, rtol=5e-3, atol=5e-2), "mismatch vs reference"

    print("KERNEL_OK")
</pallas_src>

<mosaic_0001>
module attributes {stable_mosaic.version = 11 : i64} {
  func.func @_fused_supermask_kernel(%arg0: i32, %arg1: memref<8x256xf32, #tpu.memory_space<vmem>>, %arg2: memref<256x256xbf16, #tpu.memory_space<vmem>>, %arg3: memref<256x256xi8, #tpu.memory_space<vmem>>, %arg4: memref<128x256xbf16, #tpu.memory_space<vmem>>, %arg5: memref<128x256xi8, #tpu.memory_space<vmem>>, %arg6: memref<128x128xbf16, #tpu.memory_space<vmem>>, %arg7: memref<128x128xi8, #tpu.memory_space<vmem>>, %arg8: memref<128x128xbf16, #tpu.memory_space<vmem>>, %arg9: memref<128x128xi8, #tpu.memory_space<vmem>>, %arg10: memref<8x128xf32, #tpu.memory_space<vmem>>) attributes {dimension_semantics = [#tpu.dimension_semantics<parallel>], iteration_bounds = array<i64: 1>, scalar_prefetch = 0 : i64, scratch_operands = 0 : i64, tpu.core_type = #tpu.core_type<tc>, window_params = [{transform_indices = @transform_0, window_bounds = array<i64: 8, 256>}, {pipeline_mode = #tpu.pipeline_mode<synchronous>, transform_indices = @transform_1, window_bounds = array<i64: 256, 256>}, {pipeline_mode = #tpu.pipeline_mode<synchronous>, transform_indices = @transform_2, window_bounds = array<i64: 256, 256>}, {pipeline_mode = #tpu.pipeline_mode<synchronous>, transform_indices = @transform_3, window_bounds = array<i64: 128, 256>}, {pipeline_mode = #tpu.pipeline_mode<synchronous>, transform_indices = @transform_4, window_bounds = array<i64: 128, 256>}, {pipeline_mode = #tpu.pipeline_mode<synchronous>, transform_indices = @transform_5, window_bounds = array<i64: 128, 128>}, {pipeline_mode = #tpu.pipeline_mode<synchronous>, transform_indices = @transform_6, window_bounds = array<i64: 128, 128>}, {pipeline_mode = #tpu.pipeline_mode<synchronous>, transform_indices = @transform_7, window_bounds = array<i64: 128, 128>}, {pipeline_mode = #tpu.pipeline_mode<synchronous>, transform_indices = @transform_8, window_bounds = array<i64: 128, 128>}, {transform_indices = @transform_9, window_bounds = array<i64: 8, 128>}]} {
    %c0 = arith.constant 0 : index
    %c0_0 = arith.constant 0 : index
    %0 = vector.load %arg1[%c0, %c0_0] : memref<8x256xf32, #tpu.memory_space<vmem>>, vector<8x256xf32>
    %1 = arith.truncf %0 : vector<8x256xf32> to vector<8x256xbf16>
    %c0_1 = arith.constant 0 : index
    %c0_2 = arith.constant 0 : index
    %2 = vector.load %arg3[%c0_1, %c0_2] : memref<256x256xi8, #tpu.memory_space<vmem>>, vector<256x256xi8>
    %c0_i8 = arith.constant 0 : i8
    %3 = vector.broadcast %c0_i8 : i8 to vector<256x256xi8>
    %4 = arith.cmpi ne, %2, %3 : vector<256x256xi8>
    %c0_3 = arith.constant 0 : index
    %c0_4 = arith.constant 0 : index
    %5 = vector.load %arg2[%c0_3, %c0_4] : memref<256x256xbf16, #tpu.memory_space<vmem>>, vector<256x256xbf16>
    %cst = arith.constant 0.000000e+00 : bf16
    %6 = vector.broadcast %cst : bf16 to vector<256x256xbf16>
    %7 = arith.select %4, %5, %6 : vector<256x256xi1>, vector<256x256xbf16>
    %cst_5 = arith.constant dense<0.000000e+00> : vector<8x256xf32>
    %8 = tpu.matmul %1, %7, %cst_5 {dimension_numbers = #tpu.dot_dimension_numbers<[1], [1], [0], [0], [0, 0, 1, 0], [], []>} : vector<8x256xbf16>, vector<256x256xbf16>, vector<8x256xf32> -> vector<8x256xf32>
    %cst_6 = arith.constant 0.000000e+00 : f32
    %9 = vector.broadcast %cst_6 : f32 to vector<8x256xf32>
    %10 = arith.maximumf %8, %9 : vector<8x256xf32>
    %11 = arith.truncf %10 : vector<8x256xf32> to vector<8x256xbf16>
    %c0_7 = arith.constant 0 : index
    %c0_8 = arith.constant 0 : index
    %12 = vector.load %arg5[%c0_7, %c0_8] : memref<128x256xi8, #tpu.memory_space<vmem>>, vector<128x256xi8>
    %c0_i8_9 = arith.constant 0 : i8
    %13 = vector.broadcast %c0_i8_9 : i8 to vector<128x256xi8>
    %14 = arith.cmpi ne, %12, %13 : vector<128x256xi8>
    %c0_10 = arith.constant 0 : index
    %c0_11 = arith.constant 0 : index
    %15 = vector.load %arg4[%c0_10, %c0_11] : memref<128x256xbf16, #tpu.memory_space<vmem>>, vector<128x256xbf16>
    %cst_12 = arith.constant 0.000000e+00 : bf16
    %16 = vector.broadcast %cst_12 : bf16 to vector<128x256xbf16>
    %17 = arith.select %14, %15, %16 : vector<128x256xi1>, vector<128x256xbf16>
    %cst_13 = arith.constant dense<0.000000e+00> : vector<8x128xf32>
    %18 = tpu.matmul %11, %17, %cst_13 {dimension_numbers = #tpu.dot_dimension_numbers<[1], [1], [0], [0], [0, 0, 1, 0], [], []>} : vector<8x256xbf16>, vector<128x256xbf16>, vector<8x128xf32> -> vector<8x128xf32>
    %cst_14 = arith.constant 0.000000e+00 : f32
    %19 = vector.broadcast %cst_14 : f32 to vector<8x128xf32>
    %20 = arith.maximumf %18, %19 : vector<8x128xf32>
    %21 = arith.truncf %20 : vector<8x128xf32> to vector<8x128xbf16>
    %c0_15 = arith.constant 0 : index
    %c0_16 = arith.constant 0 : index
    %22 = vector.load %arg7[%c0_15, %c0_16] : memref<128x128xi8, #tpu.memory_space<vmem>>, vector<128x128xi8>
    %c0_i8_17 = arith.constant 0 : i8
    %23 = vector.broadcast %c0_i8_17 : i8 to vector<128x128xi8>
    %24 = arith.cmpi ne, %22, %23 : vector<128x128xi8>
    %c0_18 = arith.constant 0 : index
    %c0_19 = arith.constant 0 : index
    %25 = vector.load %arg6[%c0_18, %c0_19] : memref<128x128xbf16, #tpu.memory_space<vmem>>, vector<128x128xbf16>
    %cst_20 = arith.constant 0.000000e+00 : bf16
    %26 = vector.broadcast %cst_20 : bf16 to vector<128x128xbf16>
    %27 = arith.select %24, %25, %26 : vector<128x128xi1>, vector<128x128xbf16>
    %cst_21 = arith.constant dense<0.000000e+00> : vector<8x128xf32>
    %28 = tpu.matmul %21, %27, %cst_21 {dimension_numbers = #tpu.dot_dimension_numbers<[1], [1], [0], [0], [0, 0, 1, 0], [], []>} : vector<8x128xbf16>, vector<128x128xbf16>, vector<8x128xf32> -> vector<8x128xf32>
    %cst_22 = arith.constant 0.000000e+00 : f32
    %29 = vector.broadcast %cst_22 : f32 to vector<8x128xf32>
    %30 = arith.maximumf %28, %29 : vector<8x128xf32>
    %31 = arith.truncf %30 : vector<8x128xf32> to vector<8x128xbf16>
    %c0_23 = arith.constant 0 : index
    %c0_24 = arith.constant 0 : index
    %32 = vector.load %arg9[%c0_23, %c0_24] : memref<128x128xi8, #tpu.memory_space<vmem>>, vector<128x128xi8>
    %c0_i8_25 = arith.constant 0 : i8
    %33 = vector.broadcast %c0_i8_25 : i8 to vector<128x128xi8>
    %34 = arith.cmpi ne, %32, %33 : vector<128x128xi8>
    %c0_26 = arith.constant 0 : index
    %c0_27 = arith.constant 0 : index
    %35 = vector.load %arg8[%c0_26, %c0_27] : memref<128x128xbf16, #tpu.memory_space<vmem>>, vector<128x128xbf16>
    %cst_28 = arith.constant 0.000000e+00 : bf16
    %36 = vector.broadcast %cst_28 : bf16 to vector<128x128xbf16>
    %37 = arith.select %34, %35, %36 : vector<128x128xi1>, vector<128x128xbf16>
    %cst_29 = arith.constant dense<0.000000e+00> : vector<8x128xf32>
    %38 = tpu.matmul %31, %37, %cst_29 {dimension_numbers = #tpu.dot_dimension_numbers<[1], [1], [0], [0], [0, 0, 1, 0], [], []>} : vector<8x128xbf16>, vector<128x128xbf16>, vector<8x128xf32> -> vector<8x128xf32>
    %c0_30 = arith.constant 0 : index
    %c0_31 = arith.constant 0 : index
    %39 = vector.load %arg10[%c0_30, %c0_31] : memref<8x128xf32, #tpu.memory_space<vmem>>, vector<8x128xf32>
    tpu.vector_store %arg10[%c0_30, %c0_31], %38 {strides = array<i32>} : memref<8x128xf32, #tpu.memory_space<vmem>>, vector<8x128xf32>,
    return
  }
  func.func @transform_0(%arg0: i32) -> (i32, i32) {
    %c0_i32 = arith.constant 0 : i32
    %c0_i32_0 = arith.constant 0 : i32
    return %arg0, %c0_i32 : i32, i32
  }
  func.func @transform_1(%arg0: i32) -> (i32, i32) {
    %c0_i32 = arith.constant 0 : i32
    %c0_i32_0 = arith.constant 0 : i32
    %c0_i32_1 = arith.constant 0 : i32
    return %c0_i32, %c0_i32_0 : i32, i32
  }
  func.func @transform_2(%arg0: i32) -> (i32, i32) {
    %c0_i32 = arith.constant 0 : i32
    %c0_i32_0 = arith.constant 0 : i32
    %c0_i32_1 = arith.constant 0 : i32
    return %c0_i32, %c0_i32_0 : i32, i32
  }
  func.func @transform_3(%arg0: i32) -> (i32, i32) {
    %c0_i32 = arith.constant 0 : i32
    %c0_i32_0 = arith.constant 0 : i32
    %c0_i32_1 = arith.constant 0 : i32
    return %c0_i32, %c0_i32_0 : i32, i32
  }
  func.func @transform_4(%arg0: i32) -> (i32, i32) {
    %c0_i32 = arith.constant 0 : i32
    %c0_i32_0 = arith.constant 0 : i32
    %c0_i32_1 = arith.constant 0 : i32
    return %c0_i32, %c0_i32_0 : i32, i32
  }
  func.func @transform_5(%arg0: i32) -> (i32, i32) {
    %c0_i32 = arith.constant 0 : i32
    %c0_i32_0 = arith.constant 0 : i32
    %c0_i32_1 = arith.constant 0 : i32
    return %c0_i32, %c0_i32_0 : i32, i32
  }
  func.func @transform_6(%arg0: i32) -> (i32, i32) {
    %c0_i32 = arith.constant 0 : i32
    %c0_i32_0 = arith.constant 0 : i32
    %c0_i32_1 = arith.constant 0 : i32
    return %c0_i32, %c0_i32_0 : i32, i32
  }
  func.func @transform_7(%arg0: i32) -> (i32, i32) {
    %c0_i32 = arith.constant 0 : i32
    %c0_i32_0 = arith.constant 0 : i32
    %c0_i32_1 = arith.constant 0 : i32
    return %c0_i32, %c0_i32_0 : i32, i32
  }
  func.func @transform_8(%arg0: i32) -> (i32, i32) {
    %c0_i32 = arith.constant 0 : i32
    %c0_i32_0 = arith.constant 0 : i32
    %c0_i32_1 = arith.constant 0 : i32
    return %c0_i32, %c0_i32_0 : i32, i32
  }
  func.func @transform_9(%arg0: i32) -> (i32, i32) {
    %c0_i32 = arith.constant 0 : i32
    %c0_i32_0 = arith.constant 0 : i32
    return %arg0, %c0_i32 : i32, i32
  }
}

</mosaic_0001>

<bundles_post_ra>
// kernel: fc_supermask_encode_forward.3
= control target key start
LH: loop header
LB: loop body
LE: loop exit
PB: predicated region body
PF: predicated region fallthrough
CT: control target
= control target key end

     0   :  { %v1699_v2 = vmov 0   ;;  %s2415_s2 = inlined_call_operand.vmem [shape: s8[256,256], index: 2, kind: input, shape index: {}]   ;;  %s2416_s1 = inlined_call_operand.vmem [shape: bf16[256,256], index: 1, kind: input, shape index: {}]   ;;  %s2417_s0 = inlined_call_operand.vmem [shape: f32[8,256], index: 0, kind: input, shape index: {}]   ;;  %s2418_s4 = inlined_call_operand.vmem [shape: s8[128,256], index: 4, kind: input, shape index: {}]   ;;  %s2419_s3 = inlined_call_operand.vmem [shape: bf16[128,256], index: 3, kind: input, shape index: {}]   ;;  %s2420_s6 = inlined_call_operand.vmem [shape: s8[128,128], index: 6, kind: input, shape index: {}]   ;;  %s2421_s5 = inlined_call_operand.vmem [shape: bf16[128,128], index: 5, kind: input, shape index: {}]   ;;  %s2422_s8 = inlined_call_operand.vmem [shape: s8[128,128], index: 8, kind: input, shape index: {}]   ;;  %s2423_s7 = inlined_call_operand.vmem [shape: bf16[128,128], index: 7, kind: input, shape index: {}]   ;;  %s2424_s9 = inlined_call_operand.vmem [shape: f32[8,128], index: 9, kind: output, shape index: {}]  }
   0x1   :  { %v46_v0 = vld [vmem:[%s2415_s2 + $0x30] sm:$0xff]  ;;  %v47_v1 = vld [vmem:[%s2415_s2 + $0x38] sm:$0xff]  ;;  %v44_v5 = vld [vmem:[%s2415_s2 + $0x20] sm:$0xff] }
   0x2   :  { %vm62_vm0 = vnez %v46_v0  ;;  %vm63_vm1 = vnez %v47_v1  ;;  %v45_v6 = vld [vmem:[%s2415_s2 + $0x28] sm:$0xff]  ;;  %vm60_vm2 = vnez %v44_v5  ;;  %v86_v41 = vld [vmem:[%s2416_s1 + $0x70] sm:$0xff]  ;;  %v87_v42 = vld [vmem:[%s2416_s1 + $0x78] sm:$0xff] }
   0x3   :  { %v110_v3 = vsel %vm62_vm0, 16843009, %v1699_v2  ;;  %v111_v4 = vsel %vm63_vm1, 16843009, %v1699_v2  ;;  %vm61_vm3 = vnez %v45_v6  ;;  %v1767_v19 = vsel %vm60_vm2, 16843009, %v1699_v2 }
   0x4   :  { %v148_v7 = vunpack.c.2.s8 %v110_v3  ;;  %v149_v8 = vunpack.c.2.s8 %v111_v4  ;;  %v150_v9 = vunpack.c.3.s8 %v110_v3  ;;  %v151_v10 = vunpack.c.3.s8 %v111_v4  ;;  %v84_v50 = vld [vmem:[%s2416_s1 + $0x60] sm:$0xff]  ;;  %v85_v55 = vld [vmem:[%s2416_s1 + $0x68] sm:$0xff]  ;;  %v42_v63 = vld [vmem:[%s2415_s2 + $0x10] sm:$0xff] }
   0x5   :  { %v144_v11 = vunpack.c.0.s8 %v110_v3  ;;  %v145_v12 = vunpack.c.0.s8 %v111_v4  ;;  %v146_v13 = vunpack.c.1.s8 %v110_v3  ;;  %v147_v14 = vunpack.c.1.s8 %v111_v4  ;;  %v43_v5 = vld [vmem:[%s2415_s2 + $0x18] sm:$0xff]  ;;  %v40_v6 = vld [vmem:[%s2415_s2] sm:$0xff] }
   0x6   :  { %v212_v15 = vpack.c.b16 %v149_v8, %v148_v7  ;;  %v214_v16 = vpack.c.b16 %v151_v10, %v150_v9  ;;  %v1770_v20 = vsel %vm61_vm3, 16843009, %v1699_v2  ;;  %v140_v23 = vunpack.c.2.s8 %v1767_v19  ;;  %v82_v9 = vld [vmem:[%s2416_s1 + $0x50] sm:$0xff] }
   0x7   :  { %v208_v17 = vpack.c.b16 %v145_v12, %v144_v11  ;;  %v210_v18 = vpack.c.b16 %v147_v14, %v146_v13  ;;  %v141_v24 = vunpack.c.2.s8 %v1770_v20  ;;  %v142_v27 = vunpack.c.3.s8 %v1767_v19  ;;  %v83_v12 = vld [vmem:[%s2416_s1 + $0x58] sm:$0xff] }
   0x8   :  { %v213_v21 = vpack.c.b8 %v212_v15, %v212_v15  ;;  %v215_v22 = vpack.c.b8 %v214_v16, %v214_v16  ;;  %v143_v28 = vunpack.c.3.s8 %v1770_v20  ;;  %v136_v30 = vunpack.c.0.s8 %v1767_v19 }
   0x9   :  { %v209_v25 = vpack.c.b8 %v208_v17, %v208_v17  ;;  %v211_v26 = vpack.c.b8 %v210_v18, %v210_v18  ;;  %v204_v29 = vpack.c.b16 %v141_v24, %v140_v23  ;;  %v137_v4 = vunpack.c.0.s8 %v1770_v20 }
   0xa   :  { %vm262_vm4 = vnez %v213_v21  ;;  %vm263_vm5 = vnez %v215_v22  ;;  %v206_v40 = vpack.c.b16 %v143_v28, %v142_v27  ;;  %v138_v11 = vunpack.c.1.s8 %v1767_v19 }
   0xb   :  { %v294_v31 = vsel %vm262_vm4, 16843009, %v1699_v2  ;;  %v295_v32 = vsel %vm263_vm5, 16843009, %v1699_v2  ;;  %vm260_vm6 = vnez %v209_v25  ;;  %vm261_vm7 = vnez %v211_v26 }
   0xc   :  { %v354_v33 = vunpack.c.1.s8 %v294_v31  ;;  %v355_v34 = vunpack.c.0.s8 %v294_v31  ;;  %v357_v35 = vunpack.c.1.s8 %v295_v32  ;;  %v358_v36 = vunpack.c.0.s8 %v295_v32 }
   0xd   :  { %v292_v37 = vsel %vm260_vm6, 16843009, %v1699_v2  ;;  %v293_v38 = vsel %vm261_vm7, 16843009, %v1699_v2  ;;  %v205_v39 = vpack.c.b8 %v204_v29, %v204_v29  ;;  %v207_v49 = vpack.c.b8 %v206_v40, %v206_v40 }
   0xe   :  { %v356_v43 = vpack.c.b16 %v354_v33, %v355_v34  ;;  %v359_v44 = vpack.c.b16 %v357_v35, %v358_v36  ;;  %v348_v45 = vunpack.c.1.s8 %v292_v37  ;;  %v349_v46 = vunpack.c.0.s8 %v292_v37  ;;  %v41_v34 = vld [vmem:[%s2415_s2 + $0x8] sm:$0xff] }
   0xf   :  { %v351_v47 = vunpack.c.1.s8 %v293_v38  ;;  %v352_v48 = vunpack.c.0.s8 %v293_v38  ;;  %vm258_vm8 = vnez %v205_v39  ;;  %vm259_vm11 = vnez %v207_v49  ;;  %v80_v39 = vld [vmem:[%s2416_s1 + $0x40] sm:$0xff] }
  0x10   :  { %vm422_vm9 = vcmp.ne.s16.totalorder %v356_v43, 0  ;;  %vm423_vm10 = vcmp.ne.s16.totalorder %v359_v44, 0  ;;  %v350_v51 = vpack.c.b16 %v348_v45, %v349_v46  ;;  %v290_v52 = vsel %vm258_vm8, 16843009, %v1699_v2 }
  0x11   :  { %v454_v53 = vsel %vm422_vm9, %v86_v41, 0  ;;  %v455_v54 = vsel %vm423_vm10, %v87_v42, 0  ;;  %v353_v56 = vpack.c.b16 %v351_v47, %v352_v48  ;;  %v291_v59 = vsel %vm259_vm11, 16843009, %v1699_v2  ;;  %v81_v47 = vld [vmem:[%s2416_s1 + $0x48] sm:$0xff] }
  0x12   :  { %v1589_v57 = vcombine.high %v454_v53, %v455_v54  ;;  %v1588_v58 = vcombine.low %v454_v53, %v455_v54  ;;  %vm420_vm12 = vcmp.ne.s16.totalorder %v350_v51, 0  ;;  %v342_v61 = vunpack.c.1.s8 %v290_v52 }
  0x13   :  { %vm421_vm13 = vcmp.ne.s16.totalorder %v353_v56, 0  ;;  %v452_v60 = vsel %vm420_vm12, %v84_v50, 0  ;;  %v343_v62 = vunpack.c.0.s8 %v290_v52  ;;  %v345_v1 = vunpack.c.1.s8 %v291_v59 }
  0x14   :  { %632 = vmatprep.subr.bf16.mxu0 %v1589_v57  ;;  %v453_v0 = vsel %vm421_vm13, %v85_v55, 0  ;;  %v346_v3 = vunpack.c.0.s8 %v291_v59  ;;  %v139_v14 = vunpack.c.1.s8 %v1770_v20  ;;  %v200_v15 = vpack.c.b16 %v137_v4, %v136_v30  ;;  %v79_v4 = vld [vmem:[%s2416_s1 + $0x38] sm:$0xff] }
  0x15   :  { %633 = vmatpush1.bf16.xpose.msra.mxu0 %v1588_v58  ;;  %v1587_v7 = vcombine.high %v452_v60, %v453_v0  ;;  %v1586_v8 = vcombine.low %v452_v60, %v453_v0  ;;  %v344_v10 = vpack.c.b16 %v342_v61, %v343_v62  ;;  %vm58_vm14 = vnez %v42_v63  ;;  %v78_v63 = vld [vmem:[%s2416_s1 + $0x30] sm:$0xff] }
  0x16   :  { %v347_v13 = vpack.c.b16 %v345_v1, %v346_v3  ;;  %vm59_vm0 = vnez %v43_v5  ;;  %v106_v16 = vsel %vm58_vm14, 16843009, %v1699_v2  ;;  %vm56_vm1 = vnez %v40_v6 }
  0x17   :  { %634 = vmatprep.subr.bf16.mxu0 %v1587_v7  ;;  %vm418_vm15 = vcmp.ne.s16.totalorder %v344_v10, 0  ;;  %v201_v18 = vpack.c.b8 %v200_v15, %v200_v15  ;;  %v202_v21 = vpack.c.b16 %v139_v14, %v138_v11  ;;  %v107_v22 = vsel %vm59_vm0, 16843009, %v1699_v2 }
  0x18   :  { %vm419_vm2 = vcmp.ne.s16.totalorder %v347_v13, 0  ;;  %v450_v17 = vsel %vm418_vm15, %v82_v9, 0  ;;  %v132_v23 = vunpack.c.2.s8 %v106_v16  ;;  %v134_v24 = vunpack.c.3.s8 %v106_v16  ;;  %v76_v13 = vld [vmem:[%s2416_s1 + $0x20] sm:$0xff] }
  0x19   :  { %v451_v19 = vsel %vm419_vm2, %v83_v12, 0  ;;  %v203_v20 = vpack.c.b8 %v202_v21, %v202_v21  ;;  %vm256_vm3 = vnez %v201_v18  ;;  %v133_v28 = vunpack.c.2.s8 %v107_v22 }
  0x1a   :  { %v1585_v25 = vcombine.high %v450_v17, %v451_v19  ;;  %v1584_v26 = vcombine.low %v450_v17, %v451_v19  ;;  %v288_v27 = vsel %vm256_vm3, 16843009, %v1699_v2  ;;  %v135_v29 = vunpack.c.3.s8 %v107_v22  ;;  %v77_v17 = vld [vmem:[%s2416_s1 + $0x28] sm:$0xff] }
  0x1b   :  { %v128_v30 = vunpack.c.0.s8 %v106_v16  ;;  %vm257_vm4 = vnez %v203_v20  ;;  %v336_v31 = vunpack.c.1.s8 %v288_v27  ;;  %v337_v32 = vunpack.c.0.s8 %v288_v27  ;;  %v54_v27 = vld [vmem:[%s2415_s2 + $0x70] sm:$0xff] }
  0x1c   :  { %v129_v33 = vunpack.c.0.s8 %v107_v22  ;;  %v289_v35 = vsel %vm257_vm4, 16843009, %v1699_v2  ;;  %v196_v36 = vpack.c.b16 %v133_v28, %v132_v23  ;;  %v198_v37 = vpack.c.b16 %v135_v29, %v134_v24  ;;  %v55_v28 = vld [vmem:[%s2415_s2 + $0x78] sm:$0xff] }
  0x1d   :  { %635 = vmatpush1.bf16.xpose.msra.mxu0 %v1586_v8  ;;  %v130_v38 = vunpack.c.1.s8 %v106_v16  ;;  %v338_v40 = vpack.c.b16 %v336_v31, %v337_v32  ;;  %v339_v41 = vunpack.c.1.s8 %v289_v35  ;;  %v340_v42 = vunpack.c.0.s8 %v289_v35 }
  0x1e   :  { %636 = vmatprep.subr.bf16.mxu0 %v1585_v25  ;;  %v131_v43 = vunpack.c.1.s8 %v107_v22  ;;  %v197_v44 = vpack.c.b8 %v196_v36, %v196_v36  ;;  %v199_v45 = vpack.c.b8 %v198_v37, %v198_v37  ;;  %v192_v46 = vpack.c.b16 %v129_v33, %v128_v30 }
  0x1f   :  { %vm57_vm5 = vnez %v41_v34  ;;  %v341_v48 = vpack.c.b16 %v339_v41, %v340_v42  ;;  %vm416_vm6 = vcmp.ne.s16.totalorder %v338_v40, 0  ;;  %v1828_v50 = vsel %vm56_vm1, 16843009, %v1699_v2 }
  0x20   :  { %v194_v49 = vpack.c.b16 %v131_v43, %v130_v38  ;;  %v448_v51 = vsel %vm416_vm6, %v80_v39, 0  ;;  %vm254_vm7 = vnez %v197_v44  ;;  %vm255_vm8 = vnez %v199_v45 }
  0x21   :  { %v193_v52 = vpack.c.b8 %v192_v46, %v192_v46  ;;  %vm417_vm9 = vcmp.ne.s16.totalorder %v341_v48, 0  ;;  %v286_v53 = vsel %vm254_vm7, 16843009, %v1699_v2  ;;  %v287_v54 = vsel %vm255_vm8, 16843009, %v1699_v2 }
  0x22   :  { %v195_v55 = vpack.c.b8 %v194_v49, %v194_v49  ;;  %v449_v56 = vsel %vm417_vm9, %v81_v47, 0  ;;  %v330_v57 = vunpack.c.1.s8 %v286_v53  ;;  %v331_v58 = vunpack.c.0.s8 %v286_v53  ;;  %v74_v49 = vld [vmem:[%s2416_s1 + $0x10] sm:$0xff]  ;;  %v75_v53 = vld [vmem:[%s2416_s1 + $0x18] sm:$0xff] }
  0x23   :  { %v333_v59 = vunpack.c.1.s8 %v287_v54  ;;  %v1583_v60 = vcombine.high %v448_v51, %v449_v56  ;;  %v1582_v61 = vcombine.low %v448_v51, %v449_v56  ;;  %v334_v62 = vunpack.c.0.s8 %v287_v54 }
  0x24   :  { %vm252_vm10 = vnez %v193_v52  ;;  %v332_v0 = vpack.c.b16 %v330_v57, %v331_v58  ;;  %vm253_vm11 = vnez %v195_v55  ;;  %v105_v3 = vsel %vm57_vm5, 16843009, %v1699_v2 }
  0x25   :  { %637 = vmatpush1.bf16.xpose.msra.mxu0 %v1584_v26  ;;  %v284_v1 = vsel %vm252_vm10, 16843009, %v1699_v2  ;;  %v335_v5 = vpack.c.b16 %v333_v59, %v334_v62  ;;  %v285_v6 = vsel %vm253_vm11, 16843009, %v1699_v2  ;;  %v124_v11 = vunpack.c.2.s8 %v1828_v50 }
  0x26   :  { %638 = vmatprep.subr.bf16.mxu0 %v1583_v60  ;;  %v324_v7 = vunpack.c.1.s8 %v284_v1  ;;  %v325_v8 = vunpack.c.0.s8 %v284_v1  ;;  %vm414_vm12 = vcmp.ne.s16.totalorder %v332_v0, 0  ;;  %v327_v9 = vunpack.c.1.s8 %v285_v6  ;;  %v72_v0 = vld [vmem:[%s2416_s1] sm:$0xff] }
  0x27   :  { %v328_v10 = vunpack.c.0.s8 %v285_v6  ;;  %vm415_vm13 = vcmp.ne.s16.totalorder %v335_v5, 0  ;;  %v446_v12 = vsel %vm414_vm12, %v78_v63, 0  ;;  %v125_v15 = vunpack.c.2.s8 %v105_v3 }
  0x28   :  { %v326_v14 = vpack.c.b16 %v324_v7, %v325_v8  ;;  %v447_v16 = vsel %vm415_vm13, %v79_v4, 0  ;;  %v126_v21 = vunpack.c.3.s8 %v1828_v50  ;;  %v127_v19 = vunpack.c.3.s8 %v105_v3  ;;  %v73_v7 = vld [vmem:[%s2416_s1 + $0x8] sm:$0xff] }
  0x29   :  { %v329_v18 = vpack.c.b16 %v327_v9, %v328_v10  ;;  %v1581_v22 = vcombine.high %v446_v12, %v447_v16  ;;  %v1580_v23 = vcombine.low %v446_v12, %v447_v16  ;;  %v188_v24 = vpack.c.b16 %v125_v15, %v124_v11 }
  0x2a   :  { %vm412_vm14 = vcmp.ne.s16.totalorder %v326_v14, 0  ;;  %v190_v26 = vpack.c.b16 %v127_v19, %v126_v21  ;;  %v120_v20 = vunpack.c.0.s8 %v1828_v50  ;;  %v121_v31 = vunpack.c.0.s8 %v105_v3  ;;  %v52_v21 = vld [vmem:[%s2415_s2 + $0x60] sm:$0xff]  ;;  %v53_v19 = vld [vmem:[%s2415_s2 + $0x68] sm:$0xff] }
  0x2b   :  { %vm413_vm15 = vcmp.ne.s16.totalorder %v329_v18, 0  ;;  %v1850_v25 = vsel %vm412_vm14, %v76_v13, 0  ;;  %v189_v30 = vpack.c.b8 %v188_v24, %v188_v24  ;;  %v122_v32 = vunpack.c.1.s8 %v1828_v50 }
  0x2c   :  { %v1859_v29 = vsel %vm413_vm15, %v77_v17, 0  ;;  %v191_v35 = vpack.c.b8 %v190_v26, %v190_v26  ;;  %v123_v36 = vunpack.c.1.s8 %v105_v3  ;;  %v184_v37 = vpack.c.b16 %v121_v31, %v120_v20 }
  0x2d   :  { %639 = vmatpush1.bf16.xpose.msra.mxu0 %v1582_v61  ;;  %v1579_v33 = vcombine.high %v1850_v25, %v1859_v29  ;;  %v1578_v34 = vcombine.low %v1850_v25, %v1859_v29  ;;  %vm250_vm0 = vnez %v189_v30  ;;  %vm70_vm1 = vnez %v54_v27 }
  0x2e   :  { %640 = vmatprep.subr.bf16.mxu0 %v1581_v22  ;;  %vm71_vm2 = vnez %v55_v28  ;;  %vm251_vm3 = vnez %v191_v35  ;;  %v282_v38 = vsel %vm250_vm0, 16843009, %v1699_v2  ;;  %v186_v39 = vpack.c.b16 %v123_v36, %v122_v32  ;;  %v102_v32 = vld [vmem:[%s2416_s1 + $0xf0] sm:$0xff] }
  0x2f   :  { %v118_v40 = vsel %vm70_vm1, 16843009, %v1699_v2  ;;  %v283_v41 = vsel %vm251_vm3, 16843009, %v1699_v2  ;;  %v318_v42 = vunpack.c.1.s8 %v282_v38  ;;  %v319_v43 = vunpack.c.0.s8 %v282_v38 }
  0x30   :  { %v185_v44 = vpack.c.b8 %v184_v37, %v184_v37  ;;  %v321_v45 = vunpack.c.1.s8 %v283_v41  ;;  %v322_v46 = vunpack.c.0.s8 %v283_v41  ;;  %v187_v47 = vpack.c.b8 %v186_v39, %v186_v39 }
  0x31   :  { %v119_v48 = vsel %vm71_vm2, 16843009, %v1699_v2  ;;  %v320_v50 = vpack.c.b16 %v318_v42, %v319_v43  ;;  %v180_v51 = vunpack.c.2.s8 %v118_v40  ;;  %v182_v56 = vunpack.c.3.s8 %v118_v40 }
  0x32   :  { %vm248_vm4 = vnez %v185_v44  ;;  %v181_v52 = vunpack.c.2.s8 %v119_v48  ;;  %v323_v54 = vpack.c.b16 %v321_v45, %v322_v46  ;;  %vm249_vm5 = vnez %v187_v47 }
  0x33   :  { %v280_v55 = vsel %vm248_vm4, 16843009, %v1699_v2  ;;  %vm410_vm6 = vcmp.ne.s16.totalorder %v320_v50, 0  ;;  %v281_v57 = vsel %vm249_vm5, 16843009, %v1699_v2  ;;  %v183_v3 = vunpack.c.3.s8 %v119_v48  ;;  %v101_v50 = vld [vmem:[%s2416_s1 + $0xe8] sm:$0xff] }
  0x34   :  { %v312_v58 = vunpack.c.1.s8 %v280_v55  ;;  %v313_v59 = vunpack.c.0.s8 %v280_v55  ;;  %vm411_vm7 = vcmp.ne.s16.totalorder %v323_v54, 0  ;;  %v1878_v60 = vsel %vm410_vm6, %v74_v49, 0  ;;  %v100_v49 = vld [vmem:[%s2416_s1 + $0xe0] sm:$0xff] }
  0x35   :  { %641 = vmatpush1.bf16.xpose.msra.mxu0 %v1580_v23  ;;  %v315_v61 = vunpack.c.1.s8 %v281_v57  ;;  %v316_v62 = vunpack.c.0.s8 %v281_v57  ;;  %v1880_v63 = vsel %vm411_vm7, %v75_v53, 0  ;;  %v244_v4 = vpack.c.b16 %v181_v52, %v180_v51 }
  0x36   :  { %642 = vmatprep.subr.bf16.mxu0 %v1579_v33  ;;  %v314_v1 = vpack.c.b16 %v312_v58, %v313_v59  ;;  %v1577_v5 = vcombine.high %v1878_v60, %v1880_v63  ;;  %v1576_v6 = vcombine.low %v1878_v60, %v1880_v63  ;;  %v176_v9 = vunpack.c.0.s8 %v118_v40 }
  0x37   :  { %v317_v8 = vpack.c.b16 %v315_v61, %v316_v62  ;;  %v245_v10 = vpack.c.b8 %v244_v4, %v244_v4  ;;  %v246_v11 = vpack.c.b16 %v183_v3, %v182_v56  ;;  %v177_v12 = vunpack.c.0.s8 %v119_v48  ;;  %v50_v61 = vld [vmem:[%s2415_s2 + $0x50] sm:$0xff]  ;;  %v51_v62 = vld [vmem:[%s2415_s2 + $0x58] sm:$0xff] }
  0x38   :  { %vm408_vm8 = vcmp.ne.s16.totalorder %v314_v1, 0  ;;  %v178_v14 = vunpack.c.1.s8 %v118_v40  ;;  %v179_v15 = vunpack.c.1.s8 %v119_v48  ;;  %vm68_vm12 = vnez %v52_v21 }
  0x39   :  { %vm409_vm9 = vcmp.ne.s16.totalorder %v317_v8, 0  ;;  %v1892_v13 = vsel %vm408_vm8, %v72_v0, 0  ;;  %v247_v17 = vpack.c.b8 %v246_v11, %v246_v11  ;;  %vm278_vm10 = vnez %v245_v10 }
  0x3a   :  { %v1894_v16 = vsel %vm409_vm9, %v73_v7, 0  ;;  %v240_v18 = vpack.c.b16 %v177_v12, %v176_v9  ;;  %v310_v24 = vsel %vm278_vm10, 16843009, %v1699_v2  ;;  %v242_v26 = vpack.c.b16 %v179_v15, %v178_v14 }
  0x3b   :  { %v1575_v22 = vcombine.high %v1892_v13, %v1894_v16  ;;  %v1574_v23 = vcombine.low %v1892_v13, %v1894_v16  ;;  %vm279_vm11 = vnez %v247_v17  ;;  %v402_v20 = vunpack.c.1.s8 %v310_v24 }
  0x3c   :  { %v403_v27 = vunpack.c.0.s8 %v310_v24  ;;  %v241_v28 = vpack.c.b8 %v240_v18, %v240_v18  ;;  %v311_v30 = vsel %vm279_vm11, 16843009, %v1699_v2  ;;  %v243_v31 = vpack.c.b8 %v242_v26, %v242_v26 }
  0x3d   :  { %643 = vmatpush1.bf16.xpose.msra.mxu0 %v1578_v34  ;;  %vm69_vm13 = vnez %v53_v19  ;;  %v405_v35 = vunpack.c.1.s8 %v311_v30  ;;  %v406_v36 = vunpack.c.0.s8 %v311_v30  ;;  %v116_v25 = vsel %vm68_vm12, 16843009, %v1699_v2  ;;  %v103_v34 = vld [vmem:[%s2416_s1 + $0xf8] sm:$0xff] }
  0x3e   :  { %644 = vmatprep.subr.bf16.mxu0 %v1577_v5  ;;  %v404_v33 = vpack.c.b16 %v402_v20, %v403_v27  ;;  %vm276_vm14 = vnez %v241_v28  ;;  %vm277_vm15 = vnez %v243_v31  ;;  %v117_v29 = vsel %vm69_vm13, 16843009, %v1699_v2  ;;  %v99_v27 = vld [vmem:[%s2416_s1 + $0xd8] sm:$0xff] }
  0x3f   :  { %v308_v37 = vsel %vm276_vm14, 16843009, %v1699_v2  ;;  %v407_v38 = vpack.c.b16 %v405_v35, %v406_v36  ;;  %v309_v39 = vsel %vm277_vm15, 16843009, %v1699_v2  ;;  %v172_v45 = vunpack.c.2.s8 %v116_v25 }
  0x40   :  { %vm438_vm0 = vcmp.ne.s16.totalorder %v404_v33, 0  ;;  %v396_v40 = vunpack.c.1.s8 %v308_v37  ;;  %v397_v42 = vunpack.c.0.s8 %v308_v37  ;;  %v399_v43 = vunpack.c.1.s8 %v309_v39  ;;  %v96_v37 = vld [vmem:[%s2416_s1 + $0xc0] sm:$0xff] }
  0x41   :  { %v1921_v41 = vsel %vm438_vm0, %v102_v32, 0  ;;  %v400_v44 = vunpack.c.0.s8 %v309_v39  ;;  %vm439_vm1 = vcmp.ne.s16.totalorder %v407_v38, 0  ;;  %v173_v46 = vunpack.c.2.s8 %v117_v29 }
  0x42   :  { %v174_v47 = vunpack.c.3.s8 %v116_v25  ;;  %v1923_v48 = vsel %vm439_vm1, %v103_v34, 0  ;;  %v398_v51 = vpack.c.b16 %v396_v40, %v397_v42  ;;  %v175_v53 = vunpack.c.3.s8 %v117_v29  ;;  %v97_v40 = vld [vmem:[%s2416_s1 + $0xc8] sm:$0xff] }
  0x43   :  { %v401_v52 = vpack.c.b16 %v399_v43, %v400_v44  ;;  %v1605_v54 = vcombine.high %v1921_v41, %v1923_v48  ;;  %v1604_v55 = vcombine.low %v1921_v41, %v1923_v48  ;;  %v236_v56 = vpack.c.b16 %v173_v46, %v172_v45 }
  0x44   :  { %v168_v57 = vunpack.c.0.s8 %v116_v25  ;;  %vm436_vm2 = vcmp.ne.s16.totalorder %v398_v51, 0  ;;  %v238_v58 = vpack.c.b16 %v175_v53, %v174_v47  ;;  %v169_v59 = vunpack.c.0.s8 %v117_v29 }
  0x45   :  { %645 = vmatpush1.bf16.xpose.msra.mxu0 %v1576_v6  ;;  %vm437_vm3 = vcmp.ne.s16.totalorder %v401_v52, 0  ;;  %v1944_v0 = vsel %vm436_vm2, %v100_v49, 0  ;;  %v237_v3 = vpack.c.b8 %v236_v56, %v236_v56  ;;  %v170_v60 = vunpack.c.1.s8 %v116_v25  ;;  %v49_v56 = vld [vmem:[%s2415_s2 + $0x48] sm:$0xff] }
  0x46   :  { %646 = vmatprep.subr.bf16.mxu0 %v1575_v22  ;;  %v1946_v1 = vsel %vm437_vm3, %v101_v50, 0  ;;  %v239_v5 = vpack.c.b8 %v238_v58, %v238_v58  ;;  %v171_v6 = vunpack.c.1.s8 %v117_v29  ;;  %v232_v7 = vpack.c.b16 %v169_v59, %v168_v57  ;;  %v98_v22 = vld [vmem:[%s2416_s1 + $0xd0] sm:$0xff] }
  0x47   :  { %v1603_v63 = vcombine.high %v1944_v0, %v1946_v1  ;;  %v1602_v4 = vcombine.low %v1944_v0, %v1946_v1  ;;  %vm274_vm4 = vnez %v237_v3  ;;  %vm66_vm5 = vnez %v50_v61 }
  0x48   :  { %vm67_vm6 = vnez %v51_v62  ;;  %vm275_vm7 = vnez %v239_v5  ;;  %v306_v8 = vsel %vm274_vm4, 16843009, %v1699_v2  ;;  %v234_v9 = vpack.c.b16 %v171_v6, %v170_v60 }
  0x49   :  { %v114_v10 = vsel %vm66_vm5, 16843009, %v1699_v2  ;;  %v307_v11 = vsel %vm275_vm7, 16843009, %v1699_v2  ;;  %v390_v12 = vunpack.c.1.s8 %v306_v8  ;;  %v391_v14 = vunpack.c.0.s8 %v306_v8 }
  0x4a   :  { %v233_v15 = vpack.c.b8 %v232_v7, %v232_v7  ;;  %v393_v17 = vunpack.c.1.s8 %v307_v11  ;;  %v394_v18 = vunpack.c.0.s8 %v307_v11  ;;  %v235_v21 = vpack.c.b8 %v234_v9, %v234_v9 }
  0x4b   :  { %v115_v19 = vsel %vm67_vm6, 16843009, %v1699_v2  ;;  %v392_v24 = vpack.c.b16 %v390_v12, %v391_v14  ;;  %v164_v26 = vunpack.c.2.s8 %v114_v10  ;;  %v166_v31 = vunpack.c.3.s8 %v114_v10 }
  0x4c   :  { %vm272_vm8 = vnez %v233_v15  ;;  %v165_v20 = vunpack.c.2.s8 %v115_v19  ;;  %v395_v28 = vpack.c.b16 %v393_v17, %v394_v18  ;;  %vm273_vm9 = vnez %v235_v21 }
  0x4d   :  { %647 = vmatpush1.bf16.xpose.msra.mxu0 %v1574_v23  ;;  %v304_v30 = vsel %vm272_vm8, 16843009, %v1699_v2  ;;  %vm434_vm10 = vcmp.ne.s16.totalorder %v392_v24, 0  ;;  %v305_v32 = vsel %vm273_vm9, 16843009, %v1699_v2  ;;  %v167_v29 = vunpack.c.3.s8 %v115_v19 }
  0x4e   :  { %648 = vmatprep.subr.bf16.mxu0 %v1605_v54  ;;  %v384_v33 = vunpack.c.1.s8 %v304_v30  ;;  %v385_v35 = vunpack.c.0.s8 %v304_v30  ;;  %vm435_vm11 = vcmp.ne.s16.totalorder %v395_v28, 0  ;;  %v1967_v36 = vsel %vm434_vm10, %v98_v22, 0  ;;  %v48_v54 = vld [vmem:[%s2415_s2 + $0x40] sm:$0xff] }
  0x4f   :  { %v387_v13 = vunpack.c.1.s8 %v305_v32  ;;  %v388_v16 = vunpack.c.0.s8 %v305_v32  ;;  %v1969_v23 = vsel %vm435_vm11, %v99_v27, 0  ;;  %v228_v34 = vpack.c.b16 %v165_v20, %v164_v26  ;;  %v92_v20 = vld [vmem:[%s2416_s1 + $0xa0] sm:$0xff]  ;;  %v93_v27 = vld [vmem:[%s2416_s1 + $0xa8] sm:$0xff] }
  0x50   :  { %v386_v25 = vpack.c.b16 %v384_v33, %v385_v35  ;;  %v1601_v38 = vcombine.high %v1967_v36, %v1969_v23  ;;  %v1600_v39 = vcombine.low %v1967_v36, %v1969_v23  ;;  %v160_v43 = vunpack.c.0.s8 %v114_v10  ;;  %v91_v36 = vld [vmem:[%s2416_s1 + $0x98] sm:$0xff] }
  0x51   :  { %v389_v42 = vpack.c.b16 %v387_v13, %v388_v16  ;;  %v229_v44 = vpack.c.b8 %v228_v34, %v228_v34  ;;  %v230_v45 = vpack.c.b16 %v167_v29, %v166_v31  ;;  %v161_v46 = vunpack.c.0.s8 %v115_v19  ;;  %v2036_v13 = vld [vmem:[%s2417_s0] sm:$0xff]  ;;  %v37_v16 = vld [vmem:[%s2417_s0 + $0x8] sm:$0xff] }
  0x52   :  { %vm432_vm12 = vcmp.ne.s16.totalorder %v386_v25, 0  ;;  %v162_v49 = vunpack.c.1.s8 %v114_v10  ;;  %v163_v50 = vunpack.c.1.s8 %v115_v19  ;;  %vm64_vm0 = vnez %v48_v54  ;;  %v95_v10 = vld [vmem:[%s2416_s1 + $0xb8] sm:$0xff] }
  0x53   :  { %vm433_vm13 = vcmp.ne.s16.totalorder %v389_v42, 0  ;;  %v1981_v47 = vsel %vm432_vm12, %v96_v37, 0  ;;  %v231_v52 = vpack.c.b8 %v230_v45, %v230_v45  ;;  %vm270_vm14 = vnez %v229_v44 }
  0x54   :  { %v1983_v51 = vsel %vm433_vm13, %v97_v40, 0  ;;  %v224_v53 = vpack.c.b16 %v161_v46, %v160_v43  ;;  %v302_v59 = vsel %vm270_vm14, 16843009, %v1699_v2  ;;  %v226_v61 = vpack.c.b16 %v163_v50, %v162_v49  ;;  %v684_v50 = vld [vmem:[%s2418_s4 + $0x38] sm:$0xff] }
  0x55   :  { %649 = vmatpush2.bf16.xpose.msra.mxu0 %v1604_v55  ;;  %v1599_v57 = vcombine.high %v1981_v47, %v1983_v51  ;;  %v1598_v58 = vcombine.low %v1981_v47, %v1983_v51  ;;  %vm271_vm15 = vnez %v231_v52  ;;  %v378_v62 = vunpack.c.1.s8 %v302_v59  ;;  %v94_v55 = vld [vmem:[%s2416_s1 + $0xb0] sm:$0xff] }
  0x56   :  { %650 = vmatprep.subr.bf16.mxu0 %v1603_v63  ;;  %v379_v3 = vunpack.c.0.s8 %v302_v59  ;;  %v225_v60 = vpack.c.b8 %v224_v53, %v224_v53  ;;  %v303_v41 = vsel %vm271_vm15, 16843009, %v1699_v2  ;;  %v227_v48 = vpack.c.b8 %v226_v61, %v226_v61 }
  0x57   :  { %vm65_vm1 = vnez %v49_v56  ;;  %v381_v6 = vunpack.c.1.s8 %v303_v41  ;;  %v382_v7 = vunpack.c.0.s8 %v303_v41  ;;  %v112_v8 = vsel %vm64_vm0, 16843009, %v1699_v2  ;;  %v90_v41 = vld [vmem:[%s2416_s1 + $0x90] sm:$0xff] }
  0x58   :  { %v380_v5 = vpack.c.b16 %v378_v62, %v379_v3  ;;  %vm268_vm2 = vnez %v225_v60  ;;  %vm269_vm3 = vnez %v227_v48  ;;  %v113_v9 = vsel %vm65_vm1, 16843009, %v1699_v2 }
  0x59   :  { %v300_v63 = vsel %vm268_vm2, 16843009, %v1699_v2  ;;  %v383_v11 = vpack.c.b16 %v381_v6, %v382_v7  ;;  %v301_v12 = vsel %vm269_vm3, 16843009, %v1699_v2  ;;  %v156_v19 = vunpack.c.2.s8 %v112_v8 }
  0x5a   :  { %vm430_vm4 = vcmp.ne.s16.totalorder %v380_v5, 0  ;;  %v372_v14 = vunpack.c.1.s8 %v300_v63  ;;  %v373_v17 = vunpack.c.0.s8 %v300_v63  ;;  %v375_v18 = vunpack.c.1.s8 %v301_v12 }
  0x5b   :  { %v2013_v15 = vsel %vm430_vm4, %v94_v55, 0  ;;  %v376_v21 = vunpack.c.0.s8 %v301_v12  ;;  %vm431_vm5 = vcmp.ne.s16.totalorder %v383_v11, 0  ;;  %v157_v22 = vunpack.c.2.s8 %v113_v9  ;;  %v88_v12 = vld [vmem:[%s2416_s1 + $0x80] sm:$0xff] }
  0x5c   :  { %v158_v24 = vunpack.c.3.s8 %v112_v8  ;;  %v2018_v26 = vsel %vm431_vm5, %v95_v10, 0  ;;  %v374_v28 = vpack.c.b16 %v372_v14, %v373_v17  ;;  %v159_v31 = vunpack.c.3.s8 %v113_v9 }
  0x5d   :  { %651 = vmatpush2.bf16.xpose.msra.mxu0 %v1602_v4  ;;  %v377_v30 = vpack.c.b16 %v375_v18, %v376_v21  ;;  %v1597_v0 = vcombine.high %v2013_v15, %v2018_v26  ;;  %v1596_v1 = vcombine.low %v2013_v15, %v2018_v26  ;;  %v220_v4 = vpack.c.b16 %v157_v22, %v156_v19  ;;  %v89_v22 = vld [vmem:[%s2416_s1 + $0x88] sm:$0xff]  ;;  %v705_v26 = vld [vmem:[%s2419_s3 + $0x60] sm:$0xff] }
  0x5e   :  { %652 = vmatprep.subr.bf16.mxu0 %v1601_v38  ;;  %v152_v32 = vunpack.c.0.s8 %v112_v8  ;;  %vm428_vm6 = vcmp.ne.s16.totalorder %v374_v28, 0  ;;  %v222_v33 = vpack.c.b16 %v159_v31, %v158_v24  ;;  %v153_v35 = vunpack.c.0.s8 %v113_v9  ;;  %v683_v38 = vld [vmem:[%s2418_s4 + $0x30] sm:$0xff]  ;;  %v681_v31 = vld [vmem:[%s2418_s4 + $0x20] sm:$0xff] }
  0x5f   :  { %vm429_vm7 = vcmp.ne.s16.totalorder %v377_v30, 0  ;;  %v2041_v37 = vsel %vm428_vm6, %v92_v20, 0  ;;  %v221_v29 = vpack.c.b8 %v220_v4, %v220_v4  ;;  %v154_v34 = vunpack.c.1.s8 %v112_v8 }
  0x60   :  { %v2043_v25 = vsel %vm429_vm7, %v93_v27, 0  ;;  %v223_v43 = vpack.c.b8 %v222_v33, %v222_v33  ;;  %v155_v44 = vunpack.c.1.s8 %v113_v9  ;;  %v216_v45 = vpack.c.b16 %v153_v35, %v152_v32  ;;  %v682_v35 = vld [vmem:[%s2418_s4 + $0x28] sm:$0xff] }
  0x61   :  { %v1595_v40 = vcombine.high %v2041_v37, %v2043_v25  ;;  %v1594_v42 = vcombine.low %v2041_v37, %v2043_v25  ;;  %vm266_vm8 = vnez %v221_v29  ;;  %v38_v46 = vpack.c.bf16 %v2036_v13, %v2036_v13  ;;  %v703_v37 = vld [vmem:[%s2419_s3 + $0x50] sm:$0xff] }
  0x62   :  { %v39_v49 = vpack.c.bf16 %v37_v16, %v37_v16  ;;  %vm267_vm9 = vnez %v223_v43  ;;  %v298_v52 = vsel %vm266_vm8, 16843009, %v1699_v2  ;;  %v218_v53 = vpack.c.b16 %v155_v44, %v154_v34 }
  0x63   :  { %vm691_vm10 = vnez %v683_v38  ;;  %v299_v54 = vsel %vm267_vm9, 16843009, %v1699_v2  ;;  %v366_v56 = vunpack.c.1.s8 %v298_v52  ;;  %v367_v59 = vunpack.c.0.s8 %v298_v52 }
  0x64   :  { %v217_v61 = vpack.c.b8 %v216_v45, %v216_v45  ;;  %664 = vmatprep.mubr.bf16.mxu0 %v39_v49  ;;  %v369_v62 = vunpack.c.1.s8 %v299_v54  ;;  %v370_v3 = vunpack.c.0.s8 %v299_v54  ;;  %v219_v60 = vpack.c.b8 %v218_v53, %v218_v53 }
  0x65   :  { %653 = vmatpush2.bf16.xpose.msra.mxu0 %v1600_v39  ;;  %vm692_vm11 = vnez %v684_v50  ;;  %v368_v48 = vpack.c.b16 %v366_v56, %v367_v59  ;;  %v715_v55 = vsel %vm691_vm10, 16843009, %v1699_v2  ;;  %vm689_vm2 = vnez %v681_v31 }
  0x66   :  { %654 = vmatprep.subr.bf16.mxu0 %v1599_v57  ;;  %vm264_vm12 = vnez %v217_v61  ;;  %v716_v5 = vsel %vm692_vm11, 16843009, %v1699_v2  ;;  %v371_v23 = vpack.c.b16 %v369_v62, %v370_v3  ;;  %vm265_vm13 = vnez %v219_v60  ;;  %v707_v62 = vld [vmem:[%s2419_s3 + $0x70] sm:$0xff] }
  0x67   :  { %v296_v39 = vsel %vm264_vm12, 16843009, %v1699_v2  ;;  %v745_v6 = vunpack.c.2.s8 %v715_v55  ;;  %vm426_vm14 = vcmp.ne.s16.totalorder %v368_v48, 0  ;;  %v297_v57 = vsel %vm265_vm13, 16843009, %v1699_v2  ;;  %v708_v48 = vld [vmem:[%s2419_s3 + $0x78] sm:$0xff] }
  0x68   :  { %v360_v7 = vunpack.c.1.s8 %v296_v39  ;;  %v361_v63 = vunpack.c.0.s8 %v296_v39  ;;  %vm427_vm15 = vcmp.ne.s16.totalorder %v371_v23, 0  ;;  %v2075_v8 = vsel %vm426_vm14, %v90_v41, 0 }
  0x69   :  { %v363_v9 = vunpack.c.1.s8 %v297_v57  ;;  %v364_v10 = vunpack.c.0.s8 %v297_v57  ;;  %v2077_v11 = vsel %vm427_vm15, %v91_v36, 0  ;;  %v746_v17 = vunpack.c.2.s8 %v716_v5 }
  0x6a   :  { %v362_v14 = vpack.c.b16 %v360_v7, %v361_v63  ;;  %v747_v18 = vunpack.c.3.s8 %v715_v55  ;;  %v1593_v21 = vcombine.high %v2075_v8, %v2077_v11  ;;  %v1592_v19 = vcombine.low %v2075_v8, %v2077_v11  ;;  %v677_v8 = vld [vmem:[%s2418_s4] sm:$0xff] }
  0x6b   :  { %v365_v24 = vpack.c.b16 %v363_v9, %v364_v10  ;;  %v748_v20 = vunpack.c.3.s8 %v716_v5  ;;  %v777_v27 = vpack.c.b16 %v746_v17, %v745_v6  ;;  %v741_v28 = vunpack.c.0.s8 %v715_v55  ;;  %v706_v9 = vld [vmem:[%s2419_s3 + $0x68] sm:$0xff] }
  0x6c   :  { %vm424_vm0 = vcmp.ne.s16.totalorder %v362_v14, 0  ;;  %v742_v30 = vunpack.c.0.s8 %v716_v5  ;;  %v743_v33 = vunpack.c.1.s8 %v715_v55  ;;  %v744_v34 = vunpack.c.1.s8 %v716_v5 }
  0x6d   :  { %655 = vmatpush2.bf16.xpose.msra.mxu0 %v1598_v58  ;;  %vm425_vm1 = vcmp.ne.s16.totalorder %v365_v24, 0  ;;  %v2095_v4 = vsel %vm424_vm0, %v88_v12, 0  ;;  %v779_v32 = vpack.c.b16 %v748_v20, %v747_v18  ;;  %v778_v29 = vpack.c.b8 %v777_v27, %v777_v27  ;;  %v679_v27 = vld [vmem:[%s2418_s4 + $0x10] sm:$0xff] }
  0x6e   :  { %656 = vmatprep.subr.bf16.mxu0 %v1597_v0  ;;  %v2103_v16 = vsel %vm425_vm1, %v89_v22, 0  ;;  %v773_v38 = vpack.c.b16 %v742_v30, %v741_v28  ;;  %v775_v44 = vpack.c.b16 %v744_v34, %v743_v33  ;;  %vm690_vm4 = vnez %v682_v35  ;;  %v680_v34 = vld [vmem:[%s2418_s4 + $0x18] sm:$0xff] }
  0x6f   :  { %v1591_v47 = vcombine.high %v2095_v4, %v2103_v16  ;;  %v1590_v51 = vcombine.low %v2095_v4, %v2103_v16  ;;  %v780_v58 = vpack.c.b8 %v779_v32, %v779_v32  ;;  %vm795_vm3 = vnez %v778_v29  ;;  %v700_v4 = vld [vmem:[%s2419_s3 + $0x38] sm:$0xff] }
  0x70   :  { %v774_v43 = vpack.c.b8 %v773_v38, %v773_v38  ;;  %v811_v0 = vsel %vm795_vm3, 16843009, %v1699_v2  ;;  %v713_v45 = vsel %vm689_vm2, 16843009, %v1699_v2  ;;  %v714_v49 = vsel %vm690_vm4, 16843009, %v1699_v2 }
  0x71   :  { %vm796_vm5 = vnez %v780_v58  ;;  %v855_v52 = vunpack.c.1.s8 %v811_v0  ;;  %v856_v53 = vunpack.c.0.s8 %v811_v0  ;;  %v776_v54 = vpack.c.b8 %v775_v44, %v775_v44 }
  0x72   :  { %v812_v50 = vsel %vm796_vm5, 16843009, %v1699_v2  ;;  %vm793_vm6 = vnez %v774_v43  ;;  %v737_v61 = vunpack.c.2.s8 %v713_v45  ;;  %v738_v41 = vunpack.c.2.s8 %v714_v49 }
  0x73   :  { %v858_v56 = vunpack.c.1.s8 %v812_v50  ;;  %v859_v59 = vunpack.c.0.s8 %v812_v50  ;;  %v857_v3 = vpack.c.b16 %v855_v52, %v856_v53  ;;  %vm794_vm7 = vnez %v776_v54  ;;  %v704_v53 = vld [vmem:[%s2419_s3 + $0x58] sm:$0xff] }
  0x74   :  { %v809_v60 = vsel %vm793_vm6, 16843009, %v1699_v2  ;;  %v810_v5 = vsel %vm794_vm7, 16843009, %v1699_v2  ;;  %v739_v57 = vunpack.c.3.s8 %v713_v45  ;;  %v740_v7 = vunpack.c.3.s8 %v714_v49 }
  0x75   :  { %657 = vmatpush2.bf16.xpose.msra.mxu0 %v1596_v1  ;;  %v860_v55 = vpack.c.b16 %v858_v56, %v859_v59  ;;  %v849_v36 = vunpack.c.1.s8 %v809_v60  ;;  %v850_v23 = vunpack.c.0.s8 %v809_v60  ;;  %vm875_vm8 = vcmp.ne.s16.totalorder %v857_v3, 0 }
  0x76   :  { %658 = vmatprep.subr.bf16.mxu0 %v1595_v40  ;;  %v852_v39 = vunpack.c.1.s8 %v810_v5  ;;  %v853_v6 = vunpack.c.0.s8 %v810_v5  ;;  %v891_v15 = vsel %vm875_vm8, %v707_v62, 0  ;;  %v769_v12 = vpack.c.b16 %v738_v41, %v737_v61  ;;  %v701_v5 = vld [vmem:[%s2419_s3 + $0x40] sm:$0xff] }
  0x77   :  { %vm876_vm9 = vcmp.ne.s16.totalorder %v860_v55, 0  ;;  %v851_v1 = vpack.c.b16 %v849_v36, %v850_v23  ;;  %v733_v40 = vunpack.c.0.s8 %v713_v45  ;;  %v771_v18 = vpack.c.b16 %v740_v7, %v739_v57 }
  0x78   :  { %v892_v63 = vsel %vm876_vm9, %v708_v48, 0  ;;  %v854_v10 = vpack.c.b16 %v852_v39, %v853_v6  ;;  %v770_v24 = vpack.c.b8 %v769_v12, %v769_v12  ;;  %v734_v20 = vunpack.c.0.s8 %v714_v49  ;;  %v678_v12 = vld [vmem:[%s2418_s4 + $0x8] sm:$0xff] }
  0x79   :  { %v1621_v14 = vcombine.high %v891_v15, %v892_v63  ;;  %v1620_v17 = vcombine.low %v891_v15, %v892_v63  ;;  %vm873_vm10 = vcmp.ne.s16.totalorder %v851_v1, 0  ;;  %v772_v30 = vpack.c.b8 %v771_v18, %v771_v18  ;;  %v702_v15 = vld [vmem:[%s2419_s3 + $0x48] sm:$0xff] }
  0x7a   :  { %vm874_vm11 = vcmp.ne.s16.totalorder %v854_v10, 0  ;;  %v889_v22 = vsel %vm873_vm10, %v705_v26, 0  ;;  %v735_v31 = vunpack.c.1.s8 %v713_v45  ;;  %v736_v32 = vunpack.c.1.s8 %v714_v49 }
  0x7b   :  { %973 = vmatprep.subr.bf16.mxu1 %v1621_v14  ;;  %v890_v28 = vsel %vm874_vm11, %v706_v9, 0  ;;  %vm791_vm12 = vnez %v770_v24  ;;  %v765_v29 = vpack.c.b16 %v734_v20, %v733_v40  ;;  %vm792_vm13 = vnez %v772_v30 }
  0x7c   :  { %974 = vmatpush1.bf16.xpose.msra.mxu1 %v1620_v17  ;;  %v1619_v33 = vcombine.high %v889_v22, %v890_v28  ;;  %v1618_v35 = vcombine.low %v889_v22, %v890_v28  ;;  %v807_v38 = vsel %vm791_vm12, 16843009, %v1699_v2  ;;  %v767_v58 = vpack.c.b16 %v736_v32, %v735_v31 }
  0x7d   :  { %659 = vmatpush2.bf16.xpose.msra.mxu0 %v1594_v42  ;;  %vm687_vm14 = vnez %v679_v27  ;;  %v808_v43 = vsel %vm792_vm13, 16843009, %v1699_v2  ;;  %v843_v44 = vunpack.c.1.s8 %v807_v38  ;;  %v844_v0 = vunpack.c.0.s8 %v807_v38 }
  0x7e   :  { %660 = vmatprep.subr.bf16.mxu0 %v1593_v21  ;;  %975 = vmatprep.subr.bf16.mxu1 %v1619_v33  ;;  %v766_v45 = vpack.c.b8 %v765_v29, %v765_v29  ;;  %v846_v49 = vunpack.c.1.s8 %v808_v43  ;;  %v847_v50 = vunpack.c.0.s8 %v808_v43  ;;  %v768_v52 = vpack.c.b8 %v767_v58, %v767_v58  ;;  %v699_v43 = vld [vmem:[%s2419_s3 + $0x30] sm:$0xff] }
  0x7f   :  { %vm688_vm15 = vnez %v680_v34  ;;  %v845_v25 = vpack.c.b16 %v843_v44, %v844_v0  ;;  %v711_v42 = vsel %vm687_vm14, 16843009, %v1699_v2  ;;  %vm685_vm6 = vnez %v677_v8 }
  0x80   :  { %vm789_vm0 = vnez %v766_v45  ;;  %v712_v21 = vsel %vm688_vm15, 16843009, %v1699_v2  ;;  %v848_v54 = vpack.c.b16 %v846_v49, %v847_v50  ;;  %vm790_vm1 = vnez %v768_v52 }
  0x81   :  { %v805_v56 = vsel %vm789_vm0, 16843009, %v1699_v2  ;;  %v729_v59 = vunpack.c.2.s8 %v711_v42  ;;  %vm871_vm2 = vcmp.ne.s16.totalorder %v845_v25, 0  ;;  %v806_v61 = vsel %vm790_vm1, 16843009, %v1699_v2 }
  0x82   :  { %v837_v62 = vunpack.c.1.s8 %v805_v56  ;;  %v838_v3 = vunpack.c.0.s8 %v805_v56  ;;  %vm872_vm3 = vcmp.ne.s16.totalorder %v848_v54, 0  ;;  %v887_v60 = vsel %vm871_vm2, %v703_v37, 0 }
  0x83   :  { %v840_v41 = vunpack.c.1.s8 %v806_v61  ;;  %v841_v48 = vunpack.c.0.s8 %v806_v61  ;;  %v888_v55 = vsel %vm872_vm3, %v704_v53, 0  ;;  %v730_v23 = vunpack.c.2.s8 %v712_v21 }
  0x84   :  { %976 = vmatpush1.bf16.xpose.msra.mxu1 %v1618_v35  ;;  %v839_v36 = vpack.c.b16 %v837_v62, %v838_v3  ;;  %v731_v39 = vunpack.c.3.s8 %v711_v42  ;;  %v1617_v6 = vcombine.high %v887_v60, %v888_v55  ;;  %v1616_v57 = vcombine.low %v887_v60, %v888_v55  ;;  %v697_v62 = vld [vmem:[%s2419_s3 + $0x20] sm:$0xff]  ;;  %v698_v3 = vld [vmem:[%s2419_s3 + $0x28] sm:$0xff] }
  0x85   :  { %661 = vmatpush2.bf16.xpose.msra.mxu0 %v1592_v19  ;;  %v842_v26 = vpack.c.b16 %v840_v41, %v841_v48  ;;  %v732_v1 = vunpack.c.3.s8 %v712_v21  ;;  %v761_v7 = vpack.c.b16 %v730_v23, %v729_v59  ;;  %v725_v63 = vunpack.c.0.s8 %v711_v42 }
  0x86   :  { %662 = vmatprep.subr.bf16.mxu0 %v1591_v47  ;;  %vm869_vm4 = vcmp.ne.s16.totalorder %v839_v36, 0  ;;  %v726_v9 = vunpack.c.0.s8 %v712_v21  ;;  %977 = vmatprep.subr.bf16.mxu1 %v1617_v6  ;;  %v727_v10 = vunpack.c.1.s8 %v711_v42  ;;  %v728_v47 = vunpack.c.1.s8 %v712_v21 }
  0x87   :  { %vm870_vm5 = vcmp.ne.s16.totalorder %v842_v26, 0  ;;  %v885_v11 = vsel %vm869_vm4, %v701_v5, 0  ;;  %v763_v19 = vpack.c.b16 %v732_v1, %v731_v39  ;;  %v762_v14 = vpack.c.b8 %v761_v7, %v761_v7  ;;  %v695_v1 = vld [vmem:[%s2419_s3 + $0x10] sm:$0xff]  ;;  %v696_v7 = vld [vmem:[%s2419_s3 + $0x18] sm:$0xff] }
  0x88   :  { %v886_v40 = vsel %vm870_vm5, %v702_v15, 0  ;;  %v757_v17 = vpack.c.b16 %v726_v9, %v725_v63  ;;  %v759_v27 = vpack.c.b16 %v728_v47, %v727_v10  ;;  %vm686_vm8 = vnez %v678_v12 }
  0x89   :  { %v1615_v18 = vcombine.high %v885_v11, %v886_v40  ;;  %v1614_v22 = vcombine.low %v885_v11, %v886_v40  ;;  %v764_v24 = vpack.c.b8 %v763_v19, %v763_v19  ;;  %vm787_vm7 = vnez %v762_v14 }
  0x8a   :  { %v758_v20 = vpack.c.b8 %v757_v17, %v757_v17  ;;  %v803_v28 = vsel %vm787_vm7, 16843009, %v1699_v2  ;;  %v2177_v30 = vsel %vm685_vm6, 16843009, %v1699_v2  ;;  %v2180_v31 = vsel %vm686_vm8, 16843009, %v1699_v2 }
  0x8b   :  { %vm788_vm9 = vnez %v764_v24  ;;  %v831_v33 = vunpack.c.1.s8 %v803_v28  ;;  %v832_v35 = vunpack.c.0.s8 %v803_v28  ;;  %v760_v29 = vpack.c.b8 %v759_v27, %v759_v27 }
  0x8c   :  { %978 = vmatpush1.bf16.xpose.msra.mxu1 %v1616_v57  ;;  %v804_v32 = vsel %vm788_vm9, 16843009, %v1699_v2  ;;  %vm785_vm10 = vnez %v758_v20  ;;  %v721_v58 = vunpack.c.2.s8 %v2177_v30  ;;  %v722_v45 = vunpack.c.2.s8 %v2180_v31 }
  0x8d   :  { %663 = vmatpush2.bf16.xpose.msra.mxu0 %v1590_v51  ;;  %979 = vmatprep.subr.bf16.mxu1 %v1615_v18  ;;  %v834_v34 = vunpack.c.1.s8 %v804_v32  ;;  %v835_v38 = vunpack.c.0.s8 %v804_v32  ;;  %v833_v44 = vpack.c.b16 %v831_v33, %v832_v35  ;;  %vm786_vm11 = vnez %v760_v29 }
  0x8e   :  { %v801_v0 = vsel %vm785_vm10, 16843009, %v1699_v2  ;;  %v802_v51 = vsel %vm786_vm11, 16843009, %v1699_v2  ;;  %v723_v25 = vunpack.c.3.s8 %v2177_v30  ;;  %v724_v53 = vunpack.c.3.s8 %v2180_v31 }
  0x8f   :  { %v836_v16 = vpack.c.b16 %v834_v34, %v835_v38  ;;  %v825_v49 = vunpack.c.1.s8 %v801_v0  ;;  %v826_v50 = vunpack.c.0.s8 %v801_v0  ;;  %vm867_vm12 = vcmp.ne.s16.totalorder %v833_v44, 0 }
  0x90   :  { %v828_v52 = vunpack.c.1.s8 %v802_v51  ;;  %v829_v37 = vunpack.c.0.s8 %v802_v51  ;;  %v883_v42 = vsel %vm867_vm12, %v699_v43, 0  ;;  %v753_v59 = vpack.c.b16 %v722_v45, %v721_v58  ;;  %v1018_v45 = vld [vmem:[%s2420_s6 + $0x18] sm:$0xff] }
  0x91   :  { %vm868_vm13 = vcmp.ne.s16.totalorder %v836_v16, 0  ;;  %v827_v21 = vpack.c.b16 %v825_v49, %v826_v50  ;;  %v755_v60 = vpack.c.b16 %v724_v53, %v723_v25  ;;  %v717_v12 = vunpack.c.0.s8 %v2177_v30 }
  0x92   :  { %v884_v54 = vsel %vm868_vm13, %v700_v4, 0  ;;  %v830_v56 = vpack.c.b16 %v828_v52, %v829_v37  ;;  %v754_v41 = vpack.c.b8 %v753_v59, %v753_v59  ;;  %v718_v40 = vunpack.c.0.s8 %v2180_v31  ;;  %v1017_v37 = vld [vmem:[%s2420_s6 + $0x10] sm:$0xff] }
  0x93   :  { %v1613_v61 = vcombine.high %v883_v42, %v884_v54  ;;  %vm865_vm14 = vcmp.ne.s16.totalorder %v827_v21, 0  ;;  %v756_v48 = vpack.c.b8 %v755_v60, %v755_v60  ;;  %v1612_v23 = vcombine.low %v883_v42, %v884_v54 }
  0x94   :  { %665 = vmatmul.mubr.bf16.vlgmr.msra.gmra.mxu0 %v38_v46  ;;  %980 = vmatpush1.bf16.xpose.msra.mxu1 %v1614_v22  ;;  %vm866_vm15 = vcmp.ne.s16.totalorder %v830_v56, 0  ;;  %v881_v55 = vsel %vm865_vm14, %v697_v62, 0  ;;  %vm783_vm0 = vnez %v754_v41  ;;  %v719_v14 = vunpack.c.1.s8 %v2177_v30  ;;  %v693_v30 = vld [vmem:[%s2419_s3] sm:$0xff] }
  0x95   :  { %981 = vmatprep.subr.bf16.mxu1 %v1613_v61  ;;  %v882_v5 = vsel %vm866_vm15, %v698_v3, 0  ;;  %vm784_vm1 = vnez %v756_v48  ;;  %v799_v36 = vsel %vm783_vm0, 16843009, %v1699_v2  ;;  %v720_v47 = vunpack.c.1.s8 %v2180_v31  ;;  %v694_v31 = vld [vmem:[%s2419_s3 + $0x8] sm:$0xff] }
  0x96   :  { %v800_v39 = vsel %vm784_vm1, 16843009, %v1699_v2  ;;  %v819_v6 = vunpack.c.1.s8 %v799_v36  ;;  %v820_v57 = vunpack.c.0.s8 %v799_v36  ;;  %v1611_v15 = vcombine.high %v881_v55, %v882_v5 }
  0x97   :  { %v822_v26 = vunpack.c.1.s8 %v800_v39  ;;  %v823_v13 = vunpack.c.0.s8 %v800_v39  ;;  %v1610_v11 = vcombine.low %v881_v55, %v882_v5  ;;  %v749_v17 = vpack.c.b16 %v718_v40, %v717_v12  ;;  %v1038_v12 = vld [vmem:[%s2421_s5 + $0x3c] sm:$0xf] }
  0x98   :  { %v821_v46 = vpack.c.b16 %v819_v6, %v820_v57  ;;  %v751_v18 = vpack.c.b16 %v720_v47, %v719_v14  ;;  %v1700_v0 = vmov 0.0   ;;  %vm1022_vm8 = vnez %v1018_v45 }
  0x99   :  { %v824_v63 = vpack.c.b16 %v822_v26, %v823_v13  ;;  %v750_v22 = vpack.c.b8 %v749_v17, %v749_v17  ;;  %1676 = vmatprep.subr.bf16.mxu0 %v1700_v0  ;;  %v1042_v4 = vsel %vm1022_vm8, 16843009, %v1699_v2  ;;  %vm1021_vm9 = vnez %v1017_v37 }
  0x9a   :  { %vm863_vm2 = vcmp.ne.s16.totalorder %v821_v46, 0  ;;  %v752_v24 = vpack.c.b8 %v751_v18, %v751_v18  ;;  %v1057_v16 = vunpack.c.2.s8 %v1042_v4  ;;  %v1058_v51 = vunpack.c.3.s8 %v1042_v4  ;;  %v1016_v46 = vld [vmem:[%s2420_s6 + $0x8] sm:$0xff] }
  0x9b   :  { %vm864_vm3 = vcmp.ne.s16.totalorder %v824_v63, 0  ;;  %v879_v9 = vsel %vm863_vm2, %v695_v1, 0  ;;  %vm781_vm4 = vnez %v750_v22  ;;  %v1055_v52 = vunpack.c.0.s8 %v1042_v4 }
  0x9c   :  { %982 = vmatpush1.bf16.xpose.msra.mxu1 %v1612_v23  ;;  %v880_v8 = vsel %vm864_vm3, %v696_v7, 0  ;;  %vm782_vm5 = vnez %v752_v24  ;;  %v797_v20 = vsel %vm781_vm4, 16843009, %v1699_v2  ;;  %v1087_v49 = vpack.c.b16 %v1057_v16, %v1057_v16  ;;  %v1035_v16 = vld [vmem:[%s2421_s5 + $0x30] sm:$0xf] }
  0x9d   :  { %983 = vmatprep.subr.bf16.mxu1 %v1611_v15  ;;  %v1609_v19 = vcombine.high %v879_v9, %v880_v8  ;;  %v1608_v10 = vcombine.low %v879_v9, %v880_v8  ;;  %v798_v27 = vsel %vm782_vm5, 16843009, %v1699_v2  ;;  %v813_v28 = vunpack.c.1.s8 %v797_v20 }
  0x9e   :  { %v814_v32 = vunpack.c.0.s8 %v797_v20  ;;  %v816_v33 = vunpack.c.1.s8 %v798_v27  ;;  %v817_v35 = vunpack.c.0.s8 %v798_v27  ;;  %v1089_v50 = vpack.c.b16 %v1058_v51, %v1058_v51  ;;  %v1036_v51 = vld [vmem:[%s2421_s5 + $0x34] sm:$0xf] }
  0x9f   :  { %v1056_v25 = vunpack.c.1.s8 %v1042_v4  ;;  %v1088_v42 = vpack.c.b8 %v1087_v49, %v1087_v49  ;;  %v1083_v53 = vpack.c.b16 %v1055_v52, %v1055_v52  ;;  %v1041_v56 = vsel %vm1021_vm9, 16843009, %v1699_v2 }
  0xa0   :  { %v815_v29 = vpack.c.b16 %v813_v28, %v814_v32  ;;  %v818_v34 = vpack.c.b16 %v816_v33, %v817_v35  ;;  %v1090_v21 = vpack.c.b8 %v1089_v50, %v1089_v50  ;;  %v1053_v60 = vunpack.c.2.s8 %v1041_v56 }
  0xa1   :  { %v1085_v54 = vpack.c.b16 %v1056_v25, %v1056_v25  ;;  %vm1105_vm10 = vnez %v1088_v42  ;;  %v1084_v59 = vpack.c.b8 %v1083_v53, %v1083_v53  ;;  %v1054_v41 = vunpack.c.3.s8 %v1041_v56 }
  0xa2   :  { %vm861_vm6 = vcmp.ne.s16.totalorder %v815_v29, 0  ;;  %vm862_vm7 = vcmp.ne.s16.totalorder %v818_v34, 0  ;;  %vm1106_vm11 = vnez %v1090_v21  ;;  %v1121_v61 = vsel %vm1105_vm10, 16843009, %v1699_v2 }
  0xa3   :  { %v877_v38 = vsel %vm861_vm6, %v693_v30, 0  ;;  %v878_v58 = vsel %vm862_vm7, %v694_v31, 0  ;;  %v1122_v62 = vsel %vm1106_vm11, 16843009, %v1699_v2  ;;  %v1086_v3 = vpack.c.b8 %v1085_v54, %v1085_v54 }
  0xa4   :  { %984 = vmatpush1.bf16.xpose.msra.mxu1 %v1610_v11  ;;  %v1607_v43 = vcombine.high %v877_v38, %v878_v58  ;;  %v1606_v44 = vcombine.low %v877_v38, %v878_v58  ;;  %vm1103_vm12 = vnez %v1084_v59  ;;  %v1165_v48 = vunpack.c.1.s8 %v1121_v61 }
  0xa5   :  { %985 = vmatprep.subr.bf16.mxu1 %v1609_v19  ;;  %v1166_v55 = vunpack.c.0.s8 %v1121_v61  ;;  %v1168_v5 = vunpack.c.1.s8 %v1122_v62  ;;  %v1169_v36 = vunpack.c.0.s8 %v1122_v62  ;;  %vm1104_vm13 = vnez %v1086_v3  ;;  %v1015_v61 = vld [vmem:[%s2420_s6] sm:$0xff] }
  0xa6   :  { %v1079_v23 = vpack.c.b16 %v1053_v60, %v1053_v60  ;;  %v1081_v39 = vpack.c.b16 %v1054_v41, %v1054_v41  ;;  %v1119_v6 = vsel %vm1103_vm12, 16843009, %v1699_v2  ;;  %v1120_v26 = vsel %vm1104_vm13, 16843009, %v1699_v2 }
  0xa7   :  { %v1167_v57 = vpack.c.b16 %v1165_v48, %v1166_v55  ;;  %v1170_v15 = vpack.c.b16 %v1168_v5, %v1169_v36  ;;  %v1051_v13 = vunpack.c.0.s8 %v1041_v56  ;;  %v1052_v7 = vunpack.c.1.s8 %v1041_v56 }
  0xa8   :  { %v1080_v1 = vpack.c.b8 %v1079_v23, %v1079_v23  ;;  %v1159_v63 = vunpack.c.1.s8 %v1119_v6  ;;  %v1160_v9 = vunpack.c.0.s8 %v1119_v6  ;;  %v1082_v8 = vpack.c.b8 %v1081_v39, %v1081_v39  ;;  %v1033_v39 = vld [vmem:[%s2421_s5 + $0x28] sm:$0xf]  ;;  %v1034_v6 = vld [vmem:[%s2421_s5 + $0x2c] sm:$0xf] }
  0xa9   :  { %v1162_v11 = vunpack.c.1.s8 %v1120_v26  ;;  %v1163_v19 = vunpack.c.0.s8 %v1120_v26  ;;  %vm1020_vm14 = vnez %v1016_v46  ;;  %vm1185_vm15 = vcmp.ne.s16.totalorder %v1167_v57, 0 }
  0xaa   :  { %vm1186_vm0 = vcmp.ne.s16.totalorder %v1170_v15, 0  ;;  %v1075_v40 = vpack.c.b16 %v1051_v13, %v1051_v13  ;;  %vm1101_vm1 = vnez %v1080_v1  ;;  %v1077_v47 = vpack.c.b16 %v1052_v7, %v1052_v7 }
  0xab   :  { %v1161_v17 = vpack.c.b16 %v1159_v63, %v1160_v9  ;;  %vm1102_vm2 = vnez %v1082_v8  ;;  %v1040_v18 = vsel %vm1020_vm14, 16843009, %v1699_v2  ;;  %v1202_v27 = vsel %vm1186_vm0, %v1038_v12, 0 }
  0xac   :  { %986 = vmatpush1.bf16.xpose.msra.mxu1 %v1608_v10  ;;  %v1037_v10 = vld [vmem:[%s2421_s5 + $0x38] sm:$0xf]  ;;  %v1164_v28 = vpack.c.b16 %v1162_v11, %v1163_v19  ;;  %v1117_v33 = vsel %vm1101_vm1, 16843009, %v1699_v2  ;;  %v1076_v35 = vpack.c.b8 %v1075_v40, %v1075_v40  ;;  %v1118_v34 = vsel %vm1102_vm2, 16843009, %v1699_v2 }
  0xad   :  { %987 = vmatprep.subr.bf16.mxu1 %v1607_v43  ;;  %v1201_v20 = vsel %vm1185_vm15, %v1037_v10, 0  ;;  %v1078_v30 = vpack.c.b8 %v1077_v47, %v1077_v47  ;;  %v1049_v31 = vunpack.c.2.s8 %v1040_v18  ;;  %v1050_v43 = vunpack.c.3.s8 %v1040_v18  ;;  %v1031_v40 = vld [vmem:[%s2421_s5 + $0x20] sm:$0xf] }
  0xae   :  { %v1629_v58 = vcombine.low %v1201_v20, %v1202_v27  ;;  %vm1183_vm3 = vcmp.ne.s16.totalorder %v1161_v17, 0  ;;  %vm1184_vm4 = vcmp.ne.s16.totalorder %v1164_v28, 0  ;;  %v1153_v4 = vunpack.c.1.s8 %v1117_v33 }
  0xaf   :  { %v1154_v49 = vunpack.c.0.s8 %v1117_v33  ;;  %v1156_v50 = vunpack.c.1.s8 %v1118_v34  ;;  %v1157_v52 = vunpack.c.0.s8 %v1118_v34  ;;  %vm1099_vm5 = vnez %v1076_v35 }
  0xb0   :  { %vm1100_vm6 = vnez %v1078_v30  ;;  %v1071_v37 = vpack.c.b16 %v1049_v31, %v1049_v31  ;;  %v1073_v25 = vpack.c.b16 %v1050_v43, %v1050_v43  ;;  %v1199_v42 = vsel %vm1183_vm3, %v1035_v16, 0 }
  0xb1   :  { %v1200_v21 = vsel %vm1184_vm4, %v1036_v51, 0  ;;  %v1115_v53 = vsel %vm1099_vm5, 16843009, %v1699_v2  ;;  %v1155_v54 = vpack.c.b16 %v1153_v4, %v1154_v49  ;;  %v1158_v56 = vpack.c.b16 %v1156_v50, %v1157_v52  ;;  %v1030_v4 = vld [vmem:[%s2421_s5 + $0x1c] sm:$0xf] }
  0xb2   :  { %v1116_v59 = vsel %vm1100_vm6, 16843009, %v1699_v2  ;;  %v1072_v62 = vpack.c.b8 %v1071_v37, %v1071_v37  ;;  %v1047_v3 = vunpack.c.0.s8 %v1040_v18  ;;  %v1628_v60 = vcombine.low %v1199_v42, %v1200_v21 }
  0xb3   :  { %v1147_v41 = vunpack.c.1.s8 %v1115_v53  ;;  %v1074_v48 = vpack.c.b8 %v1073_v25, %v1073_v25  ;;  %v1048_v55 = vunpack.c.1.s8 %v1040_v18  ;;  %v1148_v5 = vunpack.c.0.s8 %v1115_v53 }
  0xb4   :  { %988 = vmatpush1.bf16.xpose.msra.mxu1 %v1606_v44  ;;  %v1150_v36 = vunpack.c.1.s8 %v1116_v59  ;;  %v1151_v23 = vunpack.c.0.s8 %v1116_v59  ;;  %vm1019_vm7 = vnez %v1015_v61  ;;  %vm1181_vm8 = vcmp.ne.s16.totalorder %v1155_v54, 0 }
  0xb5   :  { %1656 = vmatprep.subr.bf16.mxu1 %v1700_v0  ;;  %vm1182_vm9 = vcmp.ne.s16.totalorder %v1158_v56, 0  ;;  %vm1097_vm10 = vnez %v1072_v62  ;;  %v1067_v57 = vpack.c.b16 %v1047_v3, %v1047_v3  ;;  %vm1098_vm11 = vnez %v1074_v48  ;;  %v1028_v48 = vld [vmem:[%s2421_s5 + $0x14] sm:$0xf] }
  0xb6   :  { %v1069_v15 = vpack.c.b16 %v1048_v55, %v1048_v55  ;;  %v1039_v26 = vsel %vm1019_vm7, 16843009, %v1699_v2  ;;  %v1197_v13 = vsel %vm1181_vm8, %v1033_v39, 0  ;;  %v1198_v46 = vsel %vm1182_vm9, %v1034_v6, 0 }
  0xb7   :  { %v1149_v1 = vpack.c.b16 %v1147_v41, %v1148_v5  ;;  %v1152_v7 = vpack.c.b16 %v1150_v36, %v1151_v23  ;;  %v1113_v63 = vsel %vm1097_vm10, 16843009, %v1699_v2  ;;  %v1114_v9 = vsel %vm1098_vm11, 16843009, %v1699_v2  ;;  %v1027_v41 = vld [vmem:[%s2421_s5 + $0x10] sm:$0xf] }
  0xb8   :  { %v1068_v8 = vpack.c.b8 %v1067_v57, %v1067_v57  ;;  %v1045_v11 = vunpack.c.2.s8 %v1039_v26  ;;  %v1046_v19 = vunpack.c.3.s8 %v1039_v26  ;;  %v1627_v10 = vcombine.low %v1197_v13, %v1198_v46 }
  0xb9   :  { %v1070_v12 = vpack.c.b8 %v1069_v15, %v1069_v15  ;;  %vm1179_vm12 = vcmp.ne.s16.totalorder %v1149_v1, 0  ;;  %vm1180_vm13 = vcmp.ne.s16.totalorder %v1152_v7, 0  ;;  %v1141_v47 = vunpack.c.1.s8 %v1113_v63  ;;  %v1025_v15 = vld [vmem:[%s2421_s5 + $0x8] sm:$0xf] }
  0xba   :  { %v1142_v17 = vunpack.c.0.s8 %v1113_v63  ;;  %v1144_v18 = vunpack.c.1.s8 %v1114_v9  ;;  %vm1095_vm14 = vnez %v1068_v8  ;;  %v1065_v20 = vpack.c.b16 %v1046_v19, %v1046_v19 }
  0xbb   :  { %vm1096_vm15 = vnez %v1070_v12  ;;  %v1195_v27 = vsel %vm1179_vm12, %v1031_v40, 0  ;;  %v1111_v35 = vsel %vm1095_vm14, 16843009, %v1699_v2  ;;  %v1024_v12 = vld [vmem:[%s2421_s5 + $0x4] sm:$0xf]  ;;  %vm1701_vm12 = vmmov 0  }
  0xbc   :  { %v1066_v30 = vpack.c.b8 %v1065_v20, %v1065_v20  ;;  %v1135_v43 = vunpack.c.1.s8 %v1111_v35  ;;  %1692 = vmatprep.mubr.msk.bf16.mxu0 %vm1701_vm12, %v1700_v0 }
  0xbe   :  { %vm1094_vm3 = vnez %v1066_v30  ;;  %v2331_v30 = vld [vmem:[%s2422_s8 + $0x8] sm:$0xff] }
  0xbf   :  { %v1110_v53 = vsel %vm1094_vm3, 16843009, %v1699_v2 }
  0xc0   :  { %v1132_v3 = vunpack.c.1.s8 %v1110_v53 }
 0x154   :  { %v666_v14 = vpop.f32.mrf.mxu0 }
 0x155   :  { %v673_v22 = vmax.f32 %v666_v14, 0.0  ;;  %v1032_v14 = vld [vmem:[%s2421_s5 + $0x24] sm:$0xf] }
 0x156   :  { %v668_v24 = vpop.f32.mrf.mxu0  ;;  %v1196_v28 = vsel %vm1180_vm13, %v1032_v14, 0 }
 0x157   :  { %v674_v32 = vmax.f32 %v668_v24, 0.0  ;;  %v675_v44 = vpack.c.bf16 %v673_v22, %v673_v22  ;;  %v1145_v22 = vunpack.c.0.s8 %v1114_v9  ;;  %v1063_v24 = vpack.c.b16 %v1045_v11, %v1045_v11 }
 0x158   :  { %v670_v29 = vpop.f32.mrf.mxu0  ;;  %v1626_v31 = vcombine.low %v1195_v27, %v1196_v28 }
 0x159   :  { %v676_v38 = vpack.c.bf16 %v674_v32, %v674_v32  ;;  %v1143_v32 = vpack.c.b16 %v1141_v47, %v1142_v17  ;;  %v1146_v33 = vpack.c.b16 %v1144_v18, %v1145_v22  ;;  %v1112_v29 = vsel %vm1096_vm15, 16843009, %v1699_v2  ;;  %v1296_v17 = vld [vmem:[%s2422_s8 + $0x18] sm:$0xff]  ;;  %v1295_v18 = vld [vmem:[%s2422_s8 + $0x10] sm:$0xff] }
 0x15a   :  { %v671_v45 = vpop.f32.mrf.mxu0  ;;  %v1064_v34 = vpack.c.b8 %v1063_v24, %v1063_v24  ;;  %v1138_v16 = vunpack.c.1.s8 %v1112_v29  ;;  %v1139_v51 = vunpack.c.0.s8 %v1112_v29  ;;  %vm1300_vm13 = vnez %v1296_v17 }
 0x15b   :  { %1005 = vmatprep.mubr.bf16.mxu1 %v676_v38  ;;  %v1043_v38 = vunpack.c.0.s8 %v1039_v26  ;;  %v1029_v45 = vld [vmem:[%s2421_s5 + $0x18] sm:$0xf]  ;;  %vm1177_vm0 = vcmp.ne.s16.totalorder %v1143_v32, 0  ;;  %vm1178_vm1 = vcmp.ne.s16.totalorder %v1146_v33, 0  ;;  %v1320_v22 = vsel %vm1300_vm13, 16843009, %v1699_v2 }
 0x15c   :  { %1006 = vmatmul.mubr.bf16.vlgmr.msra.gmra.mxu1 %v675_v44  ;;  %v1136_v44 = vunpack.c.0.s8 %v1111_v35  ;;  %vm1093_vm2 = vnez %v1064_v34  ;;  %v1193_v52 = vsel %vm1177_vm0, %v1029_v45, 0  ;;  %v1194_v37 = vsel %vm1178_vm1, %v1030_v4, 0 }
 0x15d   :  { %1657 = vmatpush3.bf16.xpose.msra.mxu1 %v1629_v58  ;;  %v1044_v58 = vunpack.c.1.s8 %v1039_v26  ;;  %v1059_v49 = vpack.c.b16 %v1043_v38, %v1043_v38  ;;  %v1140_v42 = vpack.c.b16 %v1138_v16, %v1139_v51  ;;  %v1109_v21 = vsel %vm1093_vm2, 16843009, %v1699_v2  ;;  %v1026_v26 = vld [vmem:[%s2421_s5 + $0xc] sm:$0xf]  ;;  %1672 = vmatprep.mubr.msk.bf16.mxu1 %vm1701_vm12, %v1700_v0 }
 0x15e   :  { %1658 = vmatprep.subr.bf16.mxu1 %v1700_v0  ;;  %v1137_v25 = vpack.c.b16 %v1135_v43, %v1136_v44  ;;  %v1625_v54 = vcombine.low %v1193_v52, %v1194_v37  ;;  %v1129_v61 = vunpack.c.1.s8 %v1109_v21  ;;  %v1130_v62 = vunpack.c.0.s8 %v1109_v21 }
 0x15f   :  { %v1061_v50 = vpack.c.b16 %v1044_v58, %v1044_v58  ;;  %v1060_v56 = vpack.c.b8 %v1059_v49, %v1059_v49  ;;  %vm1176_vm5 = vcmp.ne.s16.totalorder %v1140_v42, 0  ;;  %vm1299_vm14 = vnez %v1295_v18 }
 0x160   :  { %vm1175_vm4 = vcmp.ne.s16.totalorder %v1137_v25, 0  ;;  %v1192_v5 = vsel %vm1176_vm5, %v1028_v48, 0  ;;  %v1131_v36 = vpack.c.b16 %v1129_v61, %v1130_v62  ;;  %v1335_v24 = vunpack.c.2.s8 %v1320_v22  ;;  %v1316_v48 = vld [vmem:[%s2423_s7 + $0x3c] sm:$0xf] }
 0x161   :  { %v1062_v59 = vpack.c.b8 %v1061_v50, %v1061_v50  ;;  %vm1091_vm6 = vnez %v1060_v56  ;;  %v1191_v55 = vsel %vm1175_vm4, %v1027_v41, 0  ;;  %v1336_v20 = vunpack.c.3.s8 %v1320_v22  ;;  %v1315_v41 = vld [vmem:[%s2423_s7 + $0x38] sm:$0xf] }
 0x162   :  { %v1107_v39 = vsel %vm1091_vm6, 16843009, %v1699_v2  ;;  %v1624_v57 = vcombine.low %v1191_v55, %v1192_v5  ;;  %vm1173_vm8 = vcmp.ne.s16.totalorder %v1131_v36, 0  ;;  %v1333_v27 = vunpack.c.0.s8 %v1320_v22 }
 0x163   :  { %vm1092_vm7 = vnez %v1062_v59  ;;  %v1123_v13 = vunpack.c.1.s8 %v1107_v39  ;;  %v1124_v46 = vunpack.c.0.s8 %v1107_v39  ;;  %v1189_v63 = vsel %vm1173_vm8, %v1025_v15, 0  ;;  %v1313_v39 = vld [vmem:[%s2423_s7 + $0x30] sm:$0xf]  ;;  %v1314_v15 = vld [vmem:[%s2423_s7 + $0x34] sm:$0xf] }
 0x164   :  { %v1108_v6 = vsel %vm1092_vm7, 16843009, %v1699_v2  ;;  %v1334_v28 = vunpack.c.1.s8 %v1320_v22  ;;  %v1319_v32 = vsel %vm1299_vm14, 16843009, %v1699_v2  ;;  %v1365_v33 = vpack.c.b16 %v1335_v24, %v1335_v24 }
 0x165   :  { %1659 = vmatpush3.bf16.xpose.msra.mxu1 %v1628_v60  ;;  %v1133_v60 = vunpack.c.0.s8 %v1110_v53  ;;  %v1126_v1 = vunpack.c.1.s8 %v1108_v6  ;;  %v1127_v7 = vunpack.c.0.s8 %v1108_v6  ;;  %v1125_v8 = vpack.c.b16 %v1123_v13, %v1124_v46 }
 0x166   :  { %1660 = vmatprep.subr.bf16.mxu1 %v1700_v0  ;;  %v1367_v35 = vpack.c.b16 %v1336_v20, %v1336_v20  ;;  %v1361_v29 = vpack.c.b16 %v1333_v27, %v1333_v27  ;;  %v1363_v34 = vpack.c.b16 %v1334_v28, %v1334_v28  ;;  %v1332_v38 = vunpack.c.3.s8 %v1319_v32 }
 0x167   :  { %v1134_v23 = vpack.c.b16 %v1132_v3, %v1133_v60  ;;  %v1128_v11 = vpack.c.b16 %v1126_v1, %v1127_v7  ;;  %vm1171_vm10 = vcmp.ne.s16.totalorder %v1125_v8, 0  ;;  %v1329_v58 = vunpack.c.0.s8 %v1319_v32 }
 0x168   :  { %v1330_v43 = vunpack.c.1.s8 %v1319_v32  ;;  %v1366_v44 = vpack.c.b8 %v1365_v33, %v1365_v33  ;;  %v1368_v45 = vpack.c.b8 %v1367_v35, %v1367_v35  ;;  %v1362_v4 = vpack.c.b8 %v1361_v29, %v1361_v29  ;;  %v1311_v33 = vld [vmem:[%s2423_s7 + $0x28] sm:$0xf] }
 0x169   :  { %vm1174_vm9 = vcmp.ne.s16.totalorder %v1134_v23, 0  ;;  %vm1172_vm11 = vcmp.ne.s16.totalorder %v1128_v11, 0  ;;  %v1364_v16 = vpack.c.b8 %v1363_v34, %v1363_v34  ;;  %v1359_v49 = vpack.c.b16 %v1332_v38, %v1332_v38  ;;  %v1312_v34 = vld [vmem:[%s2423_s7 + $0x2c] sm:$0xf] }
 0x16a   :  { %v1190_v9 = vsel %vm1174_vm9, %v1026_v26, 0  ;;  %v1188_v14 = vsel %vm1172_vm11, %v1024_v12, 0  ;;  %v1353_v50 = vpack.c.b16 %v1329_v58, %v1329_v58  ;;  %v1355_v52 = vpack.c.b16 %v1330_v43, %v1330_v43 }
 0x16b   :  { %v1623_v19 = vcombine.low %v1189_v63, %v1190_v9  ;;  %vm1298_vm15 = vnez %v2331_v30  ;;  %vm1383_vm0 = vnez %v1366_v44  ;;  %vm1384_vm1 = vnez %v1368_v45 }
 0x16c   :  { %vm1381_vm2 = vnez %v1362_v4  ;;  %vm1382_vm3 = vnez %v1364_v16  ;;  %v1399_v37 = vsel %vm1383_vm0, 16843009, %v1699_v2  ;;  %v1400_v25 = vsel %vm1384_vm1, 16843009, %v1699_v2 }
 0x16d   :  { %1661 = vmatpush3.bf16.xpose.msra.mxu1 %v1627_v10  ;;  %v1023_v10 = vld [vmem:[%s2421_s5] sm:$0xf]  ;;  %v1397_v42 = vsel %vm1381_vm2, 16843009, %v1699_v2  ;;  %v1443_v53 = vunpack.c.1.s8 %v1399_v37  ;;  %v1446_v56 = vunpack.c.1.s8 %v1400_v25  ;;  %v1447_v59 = vunpack.c.0.s8 %v1400_v25 }
 0x16e   :  { %1662 = vmatprep.subr.bf16.mxu1 %v1700_v0  ;;  %v1187_v40 = vsel %vm1171_vm10, %v1023_v10, 0  ;;  %v1398_v61 = vsel %vm1382_vm3, 16843009, %v1699_v2  ;;  %v1437_v62 = vunpack.c.1.s8 %v1397_v42  ;;  %v1438_v3 = vunpack.c.0.s8 %v1397_v42 }
 0x16f   :  { %v1622_v47 = vcombine.low %v1187_v40, %v1188_v14  ;;  %v1360_v60 = vpack.c.b8 %v1359_v49, %v1359_v49  ;;  %v1448_v5 = vpack.c.b16 %v1446_v56, %v1447_v59  ;;  %v1440_v36 = vunpack.c.1.s8 %v1398_v61 }
 0x170   :  { %v1441_v23 = vunpack.c.0.s8 %v1398_v61  ;;  %v1439_v6 = vpack.c.b16 %v1437_v62, %v1438_v3  ;;  %v1356_v40 = vpack.c.b8 %v1355_v52, %v1355_v52  ;;  %v1318_v14 = vsel %vm1298_vm15, 16843009, %v1699_v2  ;;  %v1309_v61 = vld [vmem:[%s2423_s7 + $0x20] sm:$0xf]  ;;  %v1310_v62 = vld [vmem:[%s2423_s7 + $0x24] sm:$0xf] }
 0x171   :  { %vm1380_vm5 = vnez %v1360_v60  ;;  %vm1464_vm7 = vcmp.ne.s16.totalorder %v1448_v5, 0  ;;  %v1327_v22 = vunpack.c.2.s8 %v1318_v14  ;;  %v1328_v24 = vunpack.c.3.s8 %v1318_v14 }
 0x172   :  { %v1442_v26 = vpack.c.b16 %v1440_v36, %v1441_v23  ;;  %v1480_v1 = vsel %vm1464_vm7, %v1316_v48, 0  ;;  %vm1461_vm8 = vcmp.ne.s16.totalorder %v1439_v6, 0  ;;  %v1396_v7 = vsel %vm1380_vm5, 16843009, %v1699_v2 }
 0x173   :  { %v1477_v8 = vsel %vm1461_vm8, %v1313_v39, 0  ;;  %v1435_v10 = vunpack.c.0.s8 %v1396_v7  ;;  %vm1378_vm11 = vnez %v1356_v40  ;;  %v1349_v28 = vpack.c.b16 %v1327_v22, %v1327_v22 }
 0x174   :  { %vm1462_vm9 = vcmp.ne.s16.totalorder %v1442_v26, 0  ;;  %v1394_v27 = vsel %vm1378_vm11, 16843009, %v1699_v2  ;;  %v1351_v58 = vpack.c.b16 %v1328_v24, %v1328_v24  ;;  %v1325_v43 = vunpack.c.0.s8 %v1318_v14 }
 0x175   :  { %1663 = vmatpush3.bf16.xpose.msra.mxu1 %v1626_v31  ;;  %v1331_v31 = vunpack.c.2.s8 %v1319_v32  ;;  %v1478_v12 = vsel %vm1462_vm9, %v1314_v15, 0  ;;  %v1293_v32 = vld [vmem:[%s2422_s8] sm:$0xff]  ;;  %v1428_v30 = vunpack.c.1.s8 %v1394_v27  ;;  %v1350_v38 = vpack.c.b8 %v1349_v28, %v1349_v28 }
 0x176   :  { %1664 = vmatprep.subr.bf16.mxu1 %v1700_v0  ;;  %v1636_v20 = vcombine.low %v1477_v8, %v1478_v12  ;;  %v1326_v44 = vunpack.c.1.s8 %v1318_v14  ;;  %vm1297_vm14 = vnez %v1293_v32  ;;  %v1352_v4 = vpack.c.b8 %v1351_v58, %v1351_v58  ;;  %v1305_v32 = vld [vmem:[%s2423_s7 + $0x10] sm:$0xf] }
 0x177   :  { %v1357_v51 = vpack.c.b16 %v1331_v31, %v1331_v31  ;;  %v1429_v31 = vunpack.c.0.s8 %v1394_v27  ;;  %vm1375_vm15 = vnez %v1350_v38 }
 0x178   :  { %v1347_v49 = vpack.c.b16 %v1326_v44, %v1326_v44  ;;  %vm1376_vm0 = vnez %v1352_v4  ;;  %v1391_v25 = vsel %vm1375_vm15, 16843009, %v1699_v2 }
 0x179   :  { %v1358_v21 = vpack.c.b8 %v1357_v51, %v1357_v51  ;;  %v1345_v51 = vpack.c.b16 %v1325_v43, %v1325_v43  ;;  %v1430_v52 = vpack.c.b16 %v1428_v30, %v1429_v31  ;;  %v1392_v42 = vsel %vm1376_vm0, 16843009, %v1699_v2 }
 0x17a   :  { %v1419_v3 = vunpack.c.1.s8 %v1391_v25  ;;  %v1420_v60 = vunpack.c.0.s8 %v1391_v25  ;;  %v1423_v48 = vunpack.c.0.s8 %v1392_v42 }
 0x17b   :  { %vm1379_vm4 = vnez %v1358_v21  ;;  %v1346_v21 = vpack.c.b8 %v1345_v51, %v1345_v51  ;;  %vm1458_vm2 = vcmp.ne.s16.totalorder %v1430_v52, 0 }
 0x17c   :  { %v1395_v13 = vsel %vm1379_vm4, 16843009, %v1699_v2  ;;  %v1474_v23 = vsel %vm1458_vm2, %v1310_v62, 0  ;;  %v1421_v39 = vpack.c.b16 %v1419_v3, %v1420_v60 }
 0x17d   :  { %1665 = vmatpush3.bf16.xpose.msra.mxu1 %v1625_v54  ;;  %v1444_v54 = vunpack.c.0.s8 %v1399_v37  ;;  %v1431_v9 = vunpack.c.1.s8 %v1395_v13  ;;  %v1432_v11 = vunpack.c.0.s8 %v1395_v13  ;;  %v1317_v37 = vsel %vm1297_vm14, 16843009, %v1699_v2 }
 0x17e   :  { %1666 = vmatprep.subr.bf16.mxu1 %v1700_v0  ;;  %v1323_v56 = vunpack.c.2.s8 %v1317_v37  ;;  %v1324_v59 = vunpack.c.3.s8 %v1317_v37  ;;  %vm1373_vm3 = vnez %v1346_v21  ;;  %v1321_v26 = vunpack.c.0.s8 %v1317_v37 }
 0x17f   :  { %v1445_v55 = vpack.c.b16 %v1443_v53, %v1444_v54  ;;  %v1348_v53 = vpack.c.b8 %v1347_v49, %v1347_v49  ;;  %vm1455_vm5 = vcmp.ne.s16.totalorder %v1421_v39, 0  ;;  %v1303_v49 = vld [vmem:[%s2423_s7 + $0x8] sm:$0xf] }
 0x180   :  { %v1343_v5 = vpack.c.b16 %v1324_v59, %v1324_v59  ;;  %v1337_v12 = vpack.c.b16 %v1321_v26, %v1321_v26 }
 0x181   :  { %vm1463_vm6 = vcmp.ne.s16.totalorder %v1445_v55, 0  ;;  %vm1374_vm4 = vnez %v1348_v53  ;;  %v1341_v55 = vpack.c.b16 %v1323_v56, %v1323_v56  ;;  %v1302_v56 = vld [vmem:[%s2423_s7 + $0x4] sm:$0xf] }
 0x182   :  { %v1479_v46 = vsel %vm1463_vm6, %v1315_v41, 0  ;;  %v1422_v41 = vunpack.c.1.s8 %v1392_v42  ;;  %v1390_v15 = vsel %vm1374_vm4, 16843009, %v1699_v2 }
 0x183   :  { %v1637_v63 = vcombine.low %v1479_v46, %v1480_v1  ;;  %v1342_v46 = vpack.c.b8 %v1341_v55, %v1341_v55  ;;  %v1344_v1 = vpack.c.b8 %v1343_v5, %v1343_v5  ;;  %v1416_v8 = vunpack.c.1.s8 %v1390_v15 }
 0x184   :  { %v1424_v6 = vpack.c.b16 %v1422_v41, %v1423_v48 }
 0x185   :  { %1667 = vmatpush3.bf16.xpose.msra.mxu1 %v1624_v57  ;;  %v1354_v57 = vpack.c.b8 %v1353_v50, %v1353_v50  ;;  %1677 = vmatpush3.bf16.xpose.msra.mxu0 %v1637_v63  ;;  %vm1371_vm7 = vnez %v1342_v46  ;;  %vm1372_vm8 = vnez %v1344_v1 }
 0x186   :  { %1668 = vmatprep.subr.bf16.mxu1 %v1700_v0  ;;  %1678 = vmatprep.subr.bf16.mxu0 %v1700_v0  ;;  %vm1456_vm6 = vcmp.ne.s16.totalorder %v1424_v6, 0  ;;  %v1387_v22 = vsel %vm1371_vm7, 16843009, %v1699_v2  ;;  %v1388_v24 = vsel %vm1372_vm8, 16843009, %v1699_v2 }
 0x187   :  { %vm1377_vm10 = vnez %v1354_v57  ;;  %v1389_v57 = vsel %vm1373_vm3, 16843009, %v1699_v2  ;;  %v1411_v30 = vunpack.c.0.s8 %v1388_v24 }
 0x188   :  { %v1393_v18 = vsel %vm1377_vm10, 16843009, %v1699_v2  ;;  %v1413_v63 = vunpack.c.1.s8 %v1389_v57 }
 0x189   :  { %v1425_v35 = vunpack.c.1.s8 %v1393_v18  ;;  %v1426_v29 = vunpack.c.0.s8 %v1393_v18 }
 0x18b   :  { %v1427_v50 = vpack.c.b16 %v1425_v35, %v1426_v29  ;;  %v1407_v35 = vunpack.c.1.s8 %v1387_v22  ;;  %v1408_v29 = vunpack.c.0.s8 %v1387_v22 }
 0x18d   :  { %1669 = vmatpush3.bf16.xpose.msra.mxu1 %v1623_v19  ;;  %v1434_v19 = vunpack.c.1.s8 %v1396_v7  ;;  %1679 = vmatpush3.bf16.xpose.msra.mxu0 %v1636_v20  ;;  %vm1457_vm1 = vcmp.ne.s16.totalorder %v1427_v50, 0  ;;  %v1322_v7 = vunpack.c.1.s8 %v1317_v37  ;;  %v1338_v20 = vpack.c.b8 %v1337_v12, %v1337_v12  ;;  %v1304_v50 = vld [vmem:[%s2423_s7 + $0xc] sm:$0xf] }
 0x18e   :  { %1670 = vmatprep.subr.bf16.mxu1 %v1700_v0  ;;  %1680 = vmatprep.subr.bf16.mxu0 %v1700_v0  ;;  %v1473_v36 = vsel %vm1457_vm1, %v1309_v61, 0  ;;  %v1409_v58 = vpack.c.b16 %v1407_v35, %v1408_v29 }
 0x18f   :  { %v1436_v17 = vpack.c.b16 %v1434_v19, %v1435_v10  ;;  %v1634_v13 = vcombine.low %v1473_v36, %v1474_v23  ;;  %v1307_v19 = vld [vmem:[%s2423_s7 + $0x18] sm:$0xf]  ;;  %v1308_v10 = vld [vmem:[%s2423_s7 + $0x1c] sm:$0xf]  ;;  %v1339_v40 = vpack.c.b16 %v1322_v7, %v1322_v7  ;;  %vm1369_vm11 = vnez %v1338_v20 }
 0x190   :  { %v1471_v14 = vsel %vm1455_vm5, %v1307_v19, 0  ;;  %v1385_v44 = vsel %vm1369_vm11, 16843009, %v1699_v2 }
 0x191   :  { %vm1460_vm13 = vcmp.ne.s16.totalorder %v1436_v17, 0  ;;  %v1340_v28 = vpack.c.b8 %v1339_v40, %v1339_v40  ;;  %v1402_v51 = vunpack.c.0.s8 %v1385_v44 }
 0x192   :  { %v1476_v16 = vsel %vm1460_vm13, %v1312_v34, 0  ;;  %v1410_v34 = vunpack.c.1.s8 %v1388_v24  ;;  %vm1451_vm13 = vcmp.ne.s16.totalorder %v1409_v58, 0 }
 0x193   :  { %v1467_v25 = vsel %vm1451_vm13, %v1303_v49, 0 }
 0x194   :  { %v1412_v43 = vpack.c.b16 %v1410_v34, %v1411_v30 }
 0x195   :  { %1671 = vmatpush3.bf16.xpose.msra.mxu1 %v1622_v47  ;;  %v1433_v47 = vpack.c.b16 %v1431_v9, %v1432_v11  ;;  %v1414_v9 = vunpack.c.0.s8 %v1389_v57  ;;  %v1417_v11 = vunpack.c.0.s8 %v1390_v15 }
 0x196   :  { %vm1452_vm14 = vcmp.ne.s16.totalorder %v1412_v43, 0 }
 0x197   :  { %vm1459_vm12 = vcmp.ne.s16.totalorder %v1433_v47, 0  ;;  %v1472_v47 = vsel %vm1456_vm6, %v1308_v10, 0  ;;  %v1415_v17 = vpack.c.b16 %v1413_v63, %v1414_v9  ;;  %v1418_v18 = vpack.c.b16 %v1416_v8, %v1417_v11 }
 0x198   :  { %v1475_v45 = vsel %vm1459_vm12, %v1311_v33, 0  ;;  %v1633_v27 = vcombine.low %v1471_v14, %v1472_v47  ;;  %v1306_v33 = vld [vmem:[%s2423_s7 + $0x14] sm:$0xf]  ;;  %vm1370_vm12 = vnez %v1340_v28 }
 0x199   :  { %v1635_v54 = vcombine.low %v1475_v45, %v1476_v16  ;;  %vm1453_vm9 = vcmp.ne.s16.totalorder %v1415_v17, 0  ;;  %vm1454_vm10 = vcmp.ne.s16.totalorder %v1418_v18, 0  ;;  %v1386_v45 = vsel %vm1370_vm12, 16843009, %v1699_v2 }
 0x19a   :  { %v1469_v31 = vsel %vm1453_vm9, %v1305_v32, 0  ;;  %v1470_v38 = vsel %vm1454_vm10, %v1306_v33, 0  ;;  %v1401_v16 = vunpack.c.1.s8 %v1385_v44  ;;  %v1404_v52 = vunpack.c.1.s8 %v1386_v45 }
 0x19b   :  { %1681 = vmatpush3.bf16.xpose.msra.mxu0 %v1635_v54  ;;  %v1632_v4 = vcombine.low %v1469_v31, %v1470_v38  ;;  %v1405_v37 = vunpack.c.0.s8 %v1386_v45  ;;  %v1468_v2 = vsel %vm1452_vm14, %v1304_v50, 0  ;;  %v1301_v54 = vld [vmem:[%s2423_s7] sm:$0xf] }
 0x19c   :  { %1682 = vmatprep.subr.bf16.mxu0 %v1700_v0  ;;  %v1403_v42 = vpack.c.b16 %v1401_v16, %v1402_v51  ;;  %v1631_v53 = vcombine.low %v1467_v25, %v1468_v2 }
 0x19d   :  { %v1406_v21 = vpack.c.b16 %v1404_v52, %v1405_v37 }
 0x19e   :  { %vm1449_vm15 = vcmp.ne.s16.totalorder %v1403_v42, 0 }
 0x19f   :  { %vm1450_vm0 = vcmp.ne.s16.totalorder %v1406_v21, 0  ;;  %v1465_v59 = vsel %vm1449_vm15, %v1301_v54, 0 }
 0x1a0   :  { %v1466_v61 = vsel %vm1450_vm0, %v1302_v56, 0 }
 0x1a1   :  { %v1630_v62 = vcombine.low %v1465_v59, %v1466_v61 }
 0x1a3   :  { %1683 = vmatpush3.bf16.xpose.msra.mxu0 %v1634_v13 }
 0x1a4   :  { %1684 = vmatprep.subr.bf16.mxu0 %v1700_v0 }
 0x1ab   :  { %1685 = vmatpush3.bf16.xpose.msra.mxu0 %v1633_v27 }
 0x1ac   :  { %1686 = vmatprep.subr.bf16.mxu0 %v1700_v0 }
 0x1b3   :  { %1687 = vmatpush3.bf16.xpose.msra.mxu0 %v1632_v4 }
 0x1b4   :  { %1688 = vmatprep.subr.bf16.mxu0 %v1700_v0 }
 0x1bb   :  { %1689 = vmatpush3.bf16.xpose.msra.mxu0 %v1631_v53 }
 0x1bc   :  { %1690 = vmatprep.subr.bf16.mxu0 %v1700_v0 }
 0x1c3   :  { %1691 = vmatpush3.bf16.xpose.msra.mxu0 %v1630_v62 }
 0x21c   :  { %v1007_v3 = vpop.f32.mrf.mxu1 }
 0x21d   :  { %v1013_v60 = vmax.f32 %v1007_v3, 0.0 }
 0x21e   :  { %v1009_v41 = vpop.f32.mrf.mxu1 }
 0x21f   :  { %v1014_v48 = vpack.c.bf16 %v1013_v60, %v1013_v60 }
 0x220   :  { %v1010_v55 = vpop.f32.mrf.mxu1 }
 0x221   :  { %1673 = vmatmul.mubr.bf16.vlgmr.msra.gmra.mxu1 %v1014_v48 }
 0x222   :  { %v1011_v5 = vpop.f32.mrf.mxu1 }
 0x2e1   :  { %v1285_v36 = vpop.f32.mrf.mxu1 }
 0x2e2   :  { %v1291_v23 = vmax.f32 %v1285_v36, 0.0 }
 0x2e3   :  { %v1674_v39 = vpop.f32.mrf.mxu1 }
 0x2e4   :  { %v1292_v6 = vpack.c.bf16 %v1291_v23, %v1291_v23 }
 0x2e5   :  { %v1288_v57 = vpop.f32.mrf.mxu1 }
 0x2e6   :  { %1693 = vmatmul.mubr.bf16.vlgmr.msra.gmra.mxu0 %v1292_v6 }
 0x2e7   :  { %v1675_v15 = vpop.f32.mrf.mxu1 }
 0x3a6   :  { %v1563_v26 = vpop.f32.mrf.mxu0 }
 0x3a7   :  { %1569 = vst [vmem:[%s2424_s9] sm:$0xff] %v1563_v26 }
 0x3a8   :  { %v1694_v0 = vpop.f32.mrf.mxu0 }
 0x3aa   :  { %v1566_v13 = vpop.f32.mrf.mxu0 }
 0x3ac   :  { %v1695_v46 = vpop.f32.mrf.mxu0 }

</bundles_post_ra>
